<compile_context>
chip_gen: v6e
topology: v6e:2x2x1
jax: 0.10.0
libtpu: 0.0.40
codegen_flags: <defaults>
</compile_context>

<pallas_src>
import jax
import jax.numpy as jnp
import numpy as np
from jax.experimental import pallas as pl
from jax.experimental.pallas import tpu as pltpu

# ---- problem sizes (small, consistent with the module) --------------------------------------
N = 2            # batch
CI = 4           # input channels ci
CO = 8           # output channels co
CH = CO // 2     # hidden ("ghost") channels c_
H = W = 16       # spatial
KS = 5           # depthwise kernel size
PAD = KS // 2    # = 2
BN_EPS = 1e-5

WCI = W * CI                    # packed input lane width  (64)
WCH = W * CH                    # packed hidden lane width (64)
W1_ROWS = WCI                   # slab rows [0, WCI)       : block-diagonal 1x1 weight
B1_ROW = WCI                    # slab row  WCI            : folded cv1 bias (lane-tiled)
K5_ROW = WCI + 1                # slab rows [WCI+1, +25)   : depthwise taps (lane-tiled, masked)
B2_ROW = WCI + 1 + KS * KS      # slab last row            : folded cv2 bias (lane-tiled)
SLAB_ROWS = B2_ROW + 1          # = 91


# ---- Pallas kernel: full GhostConv forward (batch fused) -------------------------------------
def ghostconv_kernel(x_ref, slab_ref, o_ref, ypad_ref):
    # x_ref    : (N*H, W*CI)        lane = w*CI + ci,  row = n*H + h
    # slab_ref : (SLAB_ROWS, W*CH)  packed, BN-folded parameters (see fold_and_pack)
    # o_ref    : (N, H, 2*W*CH)     lanes [0, WCH) = y, [WCH, 2*WCH) = z  (lane-dense rows)
    # ypad_ref : (N, H+4, W*CH)     row-padded cv1 output (VMEM scratch)

    # ---- cv1: 1x1 conv as one MXU matmul against a block-diagonal weight, + SiLU ------------
    x = x_ref[...]
    w1 = slab_ref[0:W1_ROWS, :]                          # (W*CI, W*CH) block-diagonal
    b1 = slab_ref[B1_ROW:B1_ROW + 1, :]                  # (1, W*CH)
    y = jnp.dot(x, w1, preferred_element_type=jnp.float32) + b1
    y = y * jax.nn.sigmoid(y)                            # SiLU, already lane-packed
    y3 = y.reshape(N, H, WCH)                            # leading-dim split only (no relayout)

    # ---- cv2: depthwise 5x5 conv (pad=2, groups=CH), BN folded, + SiLU -----------------------
    # Scratch is tiny (~6 vregs) and zeroed ONCE per call (single grid step), not per step.
    ypad_ref[...] = jnp.zeros(ypad_ref.shape, ypad_ref.dtype)
    ypad_ref[:, PAD:PAD + H, :] = y3

    acc = jnp.zeros((N, H, WCH), jnp.float32)
    for dh in range(KS):
        rows = ypad_ref[:, dh:dh + H, :]                 # per-dh Ref slice -> small live set
        for dw in range(KS):
            shift = ((PAD - dw) * CH) % WCH              # dw shift as a lane rotation
            tap = rows if shift == 0 else pltpu.roll(rows, shift=shift, axis=2)
            # Wrapped-around lanes are killed by the zero border weights baked into k5m.
            acc = acc + tap * slab_ref[K5_ROW + dh * KS + dw, :]
    z = acc + slab_ref[B2_ROW, :]
    z3 = z * jax.nn.sigmoid(z)                           # SiLU

    # ---- cat([y, z], channel): assemble contiguously -> one unmasked (16,128) store ---------
    o_ref[...] = jnp.concatenate([y3, z3], axis=-1).astype(o_ref.dtype)


# ---- wrapper: BN folding + lane-layout parameter packing (one-time, XLA side) ----------------
def fold_and_pack(raw, eps=BN_EPS):
    """Fold BatchNorm into the conv weights and pack everything into one (91, W*CH) slab."""
    w1, g1, be1, m1, v1, w2, g2, be2, m2, v2 = raw

    s1 = g1 / jnp.sqrt(v1 + eps)                         # (CH,)
    w1_eff = w1[:, :, 0, 0] * s1[:, None]                # (CH, CI)   BN1 folded
    b1_eff = be1 - m1 * s1                               # (CH,)
    s2 = g2 / jnp.sqrt(v2 + eps)                         # (CH,)
    k5_eff = w2[:, 0, :, :] * s2[:, None, None]          # (CH, 5, 5) BN2 folded
    b2_eff = be2 - m2 * s2                               # (CH,)

    # Block-diagonal 1x1 weight for the lane-packed matmul:
    #   y[row, w*CH+co] = sum_ci x[row, w*CI+ci] * w1_eff[co, ci]
    w1_big = jnp.kron(jnp.eye(W, dtype=jnp.float32), jnp.transpose(w1_eff))  # (W*CI, W*CH)

    # Lane-tiled biases.
    b1_t = jnp.tile(b1_eff, W)[None, :]                  # (1, W*CH)
    b2_t = jnp.tile(b2_eff, W)[None, :]                  # (1, W*CH)

    # Per-tap lane-expanded depthwise weights with the W-border mask folded in:
    #   k5m[dh*5+dw, w*CH+c] = k5_eff[c, dh, dw] if 0 <= w+dw-2 < W else 0
    k5_rows = jnp.transpose(k5_eff, (1, 2, 0)).reshape(KS * KS, CH)          # (25, CH)
    w_idx = jnp.arange(W)
    dw = jnp.arange(KS * KS) % KS
    src_w = w_idx[None, :] + dw[:, None] - PAD                               # (25, W)
    valid = ((src_w >= 0) & (src_w < W)).astype(jnp.float32)
    k5m = (valid[:, :, None] * k5_rows[:, None, :]).reshape(KS * KS, WCH)    # (25, W*CH)

    slab = jnp.concatenate([w1_big, b1_t, k5m, b2_t], axis=0).astype(jnp.float32)
    assert slab.shape == (SLAB_ROWS, WCH)
    return slab


def ghost_conv(x_nchw, slab):
    """x: (N, CI, H, W) float32 (PyTorch NCHW). Returns (N, CO, H, W)."""
    n, ci, h, w = x_nchw.shape
    # Lane-pack the input: row = n*H + h, lane = w*CI + ci (layout plumbing, wrapper side).
    x_packed = jnp.transpose(x_nchw, (0, 2, 3, 1)).reshape(n * h, w * ci)

    out = pl.pallas_call(
        ghostconv_kernel,
        out_shape=jax.ShapeDtypeStruct((n, h, 2 * w * CH), x_nchw.dtype),
        grid_spec=pltpu.PrefetchScalarGridSpec(
            num_scalar_prefetch=0,
            grid=(1,),                                   # batch fused into one invocation
            in_specs=[
                pl.BlockSpec((n * h, w * ci), lambda i: (0, 0)),       # packed activations
                pl.BlockSpec((SLAB_ROWS, WCH), lambda i: (0, 0)),      # single param slab
            ],
            out_specs=pl.BlockSpec((n, h, 2 * w * CH), lambda i: (0, 0, 0)),
            scratch_shapes=[pltpu.VMEM((n, h + 2 * PAD, w * CH), jnp.float32)],
        ),
        compiler_params=pltpu.CompilerParams(dimension_semantics=("arbitrary",)),
    )(x_packed, slab)

    # Unpack: (N, H, 2, W, CH) -> (N, [y|z] x CH, H, W) == torch.cat([y, z], dim=1) in NCHW.
    out5 = out.reshape(n, h, 2, w, CH)
    return jnp.transpose(out5, (0, 2, 4, 1, 3)).reshape(n, CO, h, w)


# ---- pure-JAX reference (mirrors PyTorch semantics, BN applied explicitly) -------------------
def reference(x, raw, eps=BN_EPS):
    w1, g1, be1, m1, v1, w2, g2, be2, m2, v2 = raw
    dn = ("NCHW", "OIHW", "NCHW")
    hp = jax.lax.Precision.HIGHEST

    def bn(t, g, b, m, v):
        return (t - m[None, :, None, None]) * (g / jnp.sqrt(v + eps))[None, :, None, None] \
               + b[None, :, None, None]

    y = jax.lax.conv_general_dilated(x, w1, (1, 1), "VALID",
                                     dimension_numbers=dn, precision=hp)
    y = bn(y, g1, be1, m1, v1)
    y = y * jax.nn.sigmoid(y)

    z = jax.lax.conv_general_dilated(y, w2, (1, 1), ((PAD, PAD), (PAD, PAD)),
                                     dimension_numbers=dn, feature_group_count=CH,
                                     precision=hp)
    z = bn(z, g2, be2, m2, v2)
    z = z * jax.nn.sigmoid(z)
    return jnp.concatenate([y, z], axis=1)


# ---- main ------------------------------------------------------------------------------------
if __name__ == "__main__":
    key = jax.random.PRNGKey(0)
    ks = jax.random.split(key, 11)

    def rnd(k, shape, scale=0.3):
        return (scale * jax.random.normal(k, shape)).astype(jnp.float32)

    raw = (
        rnd(ks[0], (CH, CI, 1, 1)),                                  # cv1 conv weight (OIHW)
        (1.0 + rnd(ks[1], (CH,), 0.1)).astype(jnp.float32),          # bn1 gamma
        rnd(ks[2], (CH,), 0.1),                                      # bn1 beta
        rnd(ks[3], (CH,), 0.1),                                      # bn1 running_mean
        jax.random.uniform(ks[4], (CH,), jnp.float32, 0.5, 1.5),     # bn1 running_var
        rnd(ks[5], (CH, 1, KS, KS)),                                 # cv2 depthwise weight (OIHW)
        (1.0 + rnd(ks[6], (CH,), 0.1)).astype(jnp.float32),          # bn2 gamma
        rnd(ks[7], (CH,), 0.1),                                      # bn2 beta
        rnd(ks[8], (CH,), 0.1),                                      # bn2 running_mean
        jax.random.uniform(ks[9], (CH,), jnp.float32, 0.5, 1.5),     # bn2 running_var
    )
    x = jax.random.normal(ks[10], (N, CI, H, W), dtype=jnp.float32)

    slab = fold_and_pack(raw)
    out = jax.block_until_ready(ghost_conv(x, slab))

    ref = reference(x, raw)
    np.testing.assert_allclose(np.asarray(out), np.asarray(ref), rtol=1e-4, atol=1e-4)

    print("KERNEL_OK")
</pallas_src>

<mosaic_0001>
module attributes {stable_mosaic.version = 11 : i64} {
  func.func @ghostconv_kernel(%arg0: i32, %arg1: memref<32x64xf32, #tpu.memory_space<vmem>>, %arg2: memref<91x64xf32, #tpu.memory_space<vmem>>, %arg3: memref<2x16x128xf32, #tpu.memory_space<vmem>>, %arg4: memref<2x20x64xf32, #tpu.memory_space<vmem>>) attributes {dimension_semantics = [#tpu.dimension_semantics<arbitrary>], iteration_bounds = array<i64: 1>, scalar_prefetch = 0 : i64, scratch_operands = 1 : i64, tpu.core_type = #tpu.core_type<tc>, window_params = [{pipeline_mode = #tpu.pipeline_mode<synchronous>, transform_indices = @transform_0, window_bounds = array<i64: 32, 64>}, {pipeline_mode = #tpu.pipeline_mode<synchronous>, transform_indices = @transform_1, window_bounds = array<i64: 91, 64>}, {pipeline_mode = #tpu.pipeline_mode<synchronous>, transform_indices = @transform_2, window_bounds = array<i64: 2, 16, 128>}]} {
    %c0 = arith.constant 0 : index
    %c0_0 = arith.constant 0 : index
    %0 = vector.load %arg1[%c0, %c0_0] : memref<32x64xf32, #tpu.memory_space<vmem>>, vector<32x64xf32>
    %c0_1 = arith.constant 0 : index
    %c0_2 = arith.constant 0 : index
    %1 = vector.load %arg2[%c0_1, %c0_2] : memref<91x64xf32, #tpu.memory_space<vmem>>, vector<64x64xf32>
    %c64 = arith.constant 64 : index
    %c0_3 = arith.constant 0 : index
    %2 = vector.load %arg2[%c64, %c0_3] : memref<91x64xf32, #tpu.memory_space<vmem>>, vector<1x64xf32>
    %cst = arith.constant dense<0.000000e+00> : vector<32x64xf32>
    %3 = tpu.matmul %0, %1, %cst {dimension_numbers = #tpu.dot_dimension_numbers<[1], [0], [0], [1], [0, 0, 1, 1], [], []>} : vector<32x64xf32>, vector<64x64xf32>, vector<32x64xf32> -> vector<32x64xf32>
    %4 = vector.broadcast %2 : vector<1x64xf32> to vector<32x64xf32>
    %5 = arith.addf %3, %4 : vector<32x64xf32>
    %6 = arith.negf %5 : vector<32x64xf32>
    %7 = math.exp %6 : vector<32x64xf32>
    %cst_4 = arith.constant 1.000000e+00 : f32
    %8 = vector.broadcast %cst_4 : f32 to vector<32x64xf32>
    %9 = arith.addf %8, %7 : vector<32x64xf32>
    %10 = arith.divf %8, %9 : vector<32x64xf32>
    %11 = arith.mulf %5, %10 : vector<32x64xf32>
    %12 = vector.shape_cast %11 : vector<32x64xf32> to vector<2x16x64xf32>
    %cst_5 = arith.constant 0.000000e+00 : f32
    %13 = vector.broadcast %cst_5 : f32 to vector<2x20x64xf32>
    %c0_6 = arith.constant 0 : index
    %c0_7 = arith.constant 0 : index
    %c0_8 = arith.constant 0 : index
    %14 = vector.load %arg4[%c0_6, %c0_7, %c0_8] : memref<2x20x64xf32, #tpu.memory_space<vmem>>, vector<2x20x64xf32>
    tpu.vector_store %arg4[%c0_6, %c0_7, %c0_8], %13 {strides = array<i32>} : memref<2x20x64xf32, #tpu.memory_space<vmem>>, vector<2x20x64xf32>,
    %c0_9 = arith.constant 0 : index
    %c2 = arith.constant 2 : index
    %c0_10 = arith.constant 0 : index
    %15 = vector.load %arg4[%c0_9, %c2, %c0_10] : memref<2x20x64xf32, #tpu.memory_space<vmem>>, vector<2x16x64xf32>
    tpu.vector_store %arg4[%c0_9, %c2, %c0_10], %12 {strides = array<i32>} : memref<2x20x64xf32, #tpu.memory_space<vmem>>, vector<2x16x64xf32>,
    %cst_11 = arith.constant 0.000000e+00 : f32
    %16 = vector.broadcast %cst_11 : f32 to vector<2x16x64xf32>
    %c0_12 = arith.constant 0 : index
    %c0_13 = arith.constant 0 : index
    %c0_14 = arith.constant 0 : index
    %17 = vector.load %arg4[%c0_12, %c0_13, %c0_14] : memref<2x20x64xf32, #tpu.memory_space<vmem>>, vector<2x16x64xf32>
    %c8_i32 = arith.constant 8 : i32
    %18 = tpu.dynamic_rotate %17 by %c8_i32 dim 2 : vector<2x16x64xf32>, i32 -> vector<2x16x64xf32>
    %c65 = arith.constant 65 : index
    %c0_15 = arith.constant 0 : index
    %19 = vector.load %arg2[%c65, %c0_15] : memref<91x64xf32, #tpu.memory_space<vmem>>, vector<1x64xf32>
    %20 = vector.shape_cast %19 : vector<1x64xf32> to vector<64xf32>
    %21 = vector.shape_cast %20 : vector<64xf32> to vector<1x1x64xf32>
    %22 = vector.broadcast %21 : vector<1x1x64xf32> to vector<2x16x64xf32>
    %23 = arith.mulf %18, %22 : vector<2x16x64xf32>
    %24 = arith.addf %16, %23 : vector<2x16x64xf32>
    %c4_i32 = arith.constant 4 : i32
    %25 = tpu.dynamic_rotate %17 by %c4_i32 dim 2 : vector<2x16x64xf32>, i32 -> vector<2x16x64xf32>
    %c66 = arith.constant 66 : index
    %c0_16 = arith.constant 0 : index
    %26 = vector.load %arg2[%c66, %c0_16] : memref<91x64xf32, #tpu.memory_space<vmem>>, vector<1x64xf32>
    %27 = vector.shape_cast %26 : vector<1x64xf32> to vector<64xf32>
    %28 = vector.shape_cast %27 : vector<64xf32> to vector<1x1x64xf32>
    %29 = vector.broadcast %28 : vector<1x1x64xf32> to vector<2x16x64xf32>
    %30 = arith.mulf %25, %29 : vector<2x16x64xf32>
    %31 = arith.addf %24, %30 : vector<2x16x64xf32>
    %c67 = arith.constant 67 : index
    %c0_17 = arith.constant 0 : index
    %32 = vector.load %arg2[%c67, %c0_17] : memref<91x64xf32, #tpu.memory_space<vmem>>, vector<1x64xf32>
    %33 = vector.shape_cast %32 : vector<1x64xf32> to vector<64xf32>
    %34 = vector.shape_cast %33 : vector<64xf32> to vector<1x1x64xf32>
    %35 = vector.broadcast %34 : vector<1x1x64xf32> to vector<2x16x64xf32>
    %36 = arith.mulf %17, %35 : vector<2x16x64xf32>
    %37 = arith.addf %31, %36 : vector<2x16x64xf32>
    %c60_i32 = arith.constant 60 : i32
    %38 = tpu.dynamic_rotate %17 by %c60_i32 dim 2 : vector<2x16x64xf32>, i32 -> vector<2x16x64xf32>
    %c68 = arith.constant 68 : index
    %c0_18 = arith.constant 0 : index
    %39 = vector.load %arg2[%c68, %c0_18] : memref<91x64xf32, #tpu.memory_space<vmem>>, vector<1x64xf32>
    %40 = vector.shape_cast %39 : vector<1x64xf32> to vector<64xf32>
    %41 = vector.shape_cast %40 : vector<64xf32> to vector<1x1x64xf32>
    %42 = vector.broadcast %41 : vector<1x1x64xf32> to vector<2x16x64xf32>
    %43 = arith.mulf %38, %42 : vector<2x16x64xf32>
    %44 = arith.addf %37, %43 : vector<2x16x64xf32>
    %c56_i32 = arith.constant 56 : i32
    %45 = tpu.dynamic_rotate %17 by %c56_i32 dim 2 : vector<2x16x64xf32>, i32 -> vector<2x16x64xf32>
    %c69 = arith.constant 69 : index
    %c0_19 = arith.constant 0 : index
    %46 = vector.load %arg2[%c69, %c0_19] : memref<91x64xf32, #tpu.memory_space<vmem>>, vector<1x64xf32>
    %47 = vector.shape_cast %46 : vector<1x64xf32> to vector<64xf32>
    %48 = vector.shape_cast %47 : vector<64xf32> to vector<1x1x64xf32>
    %49 = vector.broadcast %48 : vector<1x1x64xf32> to vector<2x16x64xf32>
    %50 = arith.mulf %45, %49 : vector<2x16x64xf32>
    %51 = arith.addf %44, %50 : vector<2x16x64xf32>
    %c0_20 = arith.constant 0 : index
    %c1 = arith.constant 1 : index
    %c0_21 = arith.constant 0 : index
    %52 = vector.load %arg4[%c0_20, %c1, %c0_21] : memref<2x20x64xf32, #tpu.memory_space<vmem>>, vector<2x16x64xf32>
    %c8_i32_22 = arith.constant 8 : i32
    %53 = tpu.dynamic_rotate %52 by %c8_i32_22 dim 2 : vector<2x16x64xf32>, i32 -> vector<2x16x64xf32>
    %c70 = arith.constant 70 : index
    %c0_23 = arith.constant 0 : index
    %54 = vector.load %arg2[%c70, %c0_23] : memref<91x64xf32, #tpu.memory_space<vmem>>, vector<1x64xf32>
    %55 = vector.shape_cast %54 : vector<1x64xf32> to vector<64xf32>
    %56 = vector.shape_cast %55 : vector<64xf32> to vector<1x1x64xf32>
    %57 = vector.broadcast %56 : vector<1x1x64xf32> to vector<2x16x64xf32>
    %58 = arith.mulf %53, %57 : vector<2x16x64xf32>
    %59 = arith.addf %51, %58 : vector<2x16x64xf32>
    %c4_i32_24 = arith.constant 4 : i32
    %60 = tpu.dynamic_rotate %52 by %c4_i32_24 dim 2 : vector<2x16x64xf32>, i32 -> vector<2x16x64xf32>
    %c71 = arith.constant 71 : index
    %c0_25 = arith.constant 0 : index
    %61 = vector.load %arg2[%c71, %c0_25] : memref<91x64xf32, #tpu.memory_space<vmem>>, vector<1x64xf32>
    %62 = vector.shape_cast %61 : vector<1x64xf32> to vector<64xf32>
    %63 = vector.shape_cast %62 : vector<64xf32> to vector<1x1x64xf32>
    %64 = vector.broadcast %63 : vector<1x1x64xf32> to vector<2x16x64xf32>
    %65 = arith.mulf %60, %64 : vector<2x16x64xf32>
    %66 = arith.addf %59, %65 : vector<2x16x64xf32>
    %c72 = arith.constant 72 : index
    %c0_26 = arith.constant 0 : index
    %67 = vector.load %arg2[%c72, %c0_26] : memref<91x64xf32, #tpu.memory_space<vmem>>, vector<1x64xf32>
    %68 = vector.shape_cast %67 : vector<1x64xf32> to vector<64xf32>
    %69 = vector.shape_cast %68 : vector<64xf32> to vector<1x1x64xf32>
    %70 = vector.broadcast %69 : vector<1x1x64xf32> to vector<2x16x64xf32>
    %71 = arith.mulf %52, %70 : vector<2x16x64xf32>
    %72 = arith.addf %66, %71 : vector<2x16x64xf32>
    %c60_i32_27 = arith.constant 60 : i32
    %73 = tpu.dynamic_rotate %52 by %c60_i32_27 dim 2 : vector<2x16x64xf32>, i32 -> vector<2x16x64xf32>
    %c73 = arith.constant 73 : index
    %c0_28 = arith.constant 0 : index
    %74 = vector.load %arg2[%c73, %c0_28] : memref<91x64xf32, #tpu.memory_space<vmem>>, vector<1x64xf32>
    %75 = vector.shape_cast %74 : vector<1x64xf32> to vector<64xf32>
    %76 = vector.shape_cast %75 : vector<64xf32> to vector<1x1x64xf32>
    %77 = vector.broadcast %76 : vector<1x1x64xf32> to vector<2x16x64xf32>
    %78 = arith.mulf %73, %77 : vector<2x16x64xf32>
    %79 = arith.addf %72, %78 : vector<2x16x64xf32>
    %c56_i32_29 = arith.constant 56 : i32
    %80 = tpu.dynamic_rotate %52 by %c56_i32_29 dim 2 : vector<2x16x64xf32>, i32 -> vector<2x16x64xf32>
    %c74 = arith.constant 74 : index
    %c0_30 = arith.constant 0 : index
    %81 = vector.load %arg2[%c74, %c0_30] : memref<91x64xf32, #tpu.memory_space<vmem>>, vector<1x64xf32>
    %82 = vector.shape_cast %81 : vector<1x64xf32> to vector<64xf32>
    %83 = vector.shape_cast %82 : vector<64xf32> to vector<1x1x64xf32>
    %84 = vector.broadcast %83 : vector<1x1x64xf32> to vector<2x16x64xf32>
    %85 = arith.mulf %80, %84 : vector<2x16x64xf32>
    %86 = arith.addf %79, %85 : vector<2x16x64xf32>
    %c0_31 = arith.constant 0 : index
    %c2_32 = arith.constant 2 : index
    %c0_33 = arith.constant 0 : index
    %87 = vector.load %arg4[%c0_31, %c2_32, %c0_33] : memref<2x20x64xf32, #tpu.memory_space<vmem>>, vector<2x16x64xf32>
    %c8_i32_34 = arith.constant 8 : i32
    %88 = tpu.dynamic_rotate %87 by %c8_i32_34 dim 2 : vector<2x16x64xf32>, i32 -> vector<2x16x64xf32>
    %c75 = arith.constant 75 : index
    %c0_35 = arith.constant 0 : index
    %89 = vector.load %arg2[%c75, %c0_35] : memref<91x64xf32, #tpu.memory_space<vmem>>, vector<1x64xf32>
    %90 = vector.shape_cast %89 : vector<1x64xf32> to vector<64xf32>
    %91 = vector.shape_cast %90 : vector<64xf32> to vector<1x1x64xf32>
    %92 = vector.broadcast %91 : vector<1x1x64xf32> to vector<2x16x64xf32>
    %93 = arith.mulf %88, %92 : vector<2x16x64xf32>
    %94 = arith.addf %86, %93 : vector<2x16x64xf32>
    %c4_i32_36 = arith.constant 4 : i32
    %95 = tpu.dynamic_rotate %87 by %c4_i32_36 dim 2 : vector<2x16x64xf32>, i32 -> vector<2x16x64xf32>
    %c76 = arith.constant 76 : index
    %c0_37 = arith.constant 0 : index
    %96 = vector.load %arg2[%c76, %c0_37] : memref<91x64xf32, #tpu.memory_space<vmem>>, vector<1x64xf32>
    %97 = vector.shape_cast %96 : vector<1x64xf32> to vector<64xf32>
    %98 = vector.shape_cast %97 : vector<64xf32> to vector<1x1x64xf32>
    %99 = vector.broadcast %98 : vector<1x1x64xf32> to vector<2x16x64xf32>
    %100 = arith.mulf %95, %99 : vector<2x16x64xf32>
    %101 = arith.addf %94, %100 : vector<2x16x64xf32>
    %c77 = arith.constant 77 : index
    %c0_38 = arith.constant 0 : index
    %102 = vector.load %arg2[%c77, %c0_38] : memref<91x64xf32, #tpu.memory_space<vmem>>, vector<1x64xf32>
    %103 = vector.shape_cast %102 : vector<1x64xf32> to vector<64xf32>
    %104 = vector.shape_cast %103 : vector<64xf32> to vector<1x1x64xf32>
    %105 = vector.broadcast %104 : vector<1x1x64xf32> to vector<2x16x64xf32>
    %106 = arith.mulf %87, %105 : vector<2x16x64xf32>
    %107 = arith.addf %101, %106 : vector<2x16x64xf32>
    %c60_i32_39 = arith.constant 60 : i32
    %108 = tpu.dynamic_rotate %87 by %c60_i32_39 dim 2 : vector<2x16x64xf32>, i32 -> vector<2x16x64xf32>
    %c78 = arith.constant 78 : index
    %c0_40 = arith.constant 0 : index
    %109 = vector.load %arg2[%c78, %c0_40] : memref<91x64xf32, #tpu.memory_space<vmem>>, vector<1x64xf32>
    %110 = vector.shape_cast %109 : vector<1x64xf32> to vector<64xf32>
    %111 = vector.shape_cast %110 : vector<64xf32> to vector<1x1x64xf32>
    %112 = vector.broadcast %111 : vector<1x1x64xf32> to vector<2x16x64xf32>
    %113 = arith.mulf %108, %112 : vector<2x16x64xf32>
    %114 = arith.addf %107, %113 : vector<2x16x64xf32>
    %c56_i32_41 = arith.constant 56 : i32
    %115 = tpu.dynamic_rotate %87 by %c56_i32_41 dim 2 : vector<2x16x64xf32>, i32 -> vector<2x16x64xf32>
    %c79 = arith.constant 79 : index
    %c0_42 = arith.constant 0 : index
    %116 = vector.load %arg2[%c79, %c0_42] : memref<91x64xf32, #tpu.memory_space<vmem>>, vector<1x64xf32>
    %117 = vector.shape_cast %116 : vector<1x64xf32> to vector<64xf32>
    %118 = vector.shape_cast %117 : vector<64xf32> to vector<1x1x64xf32>
    %119 = vector.broadcast %118 : vector<1x1x64xf32> to vector<2x16x64xf32>
    %120 = arith.mulf %115, %119 : vector<2x16x64xf32>
    %121 = arith.addf %114, %120 : vector<2x16x64xf32>
    %c0_43 = arith.constant 0 : index
    %c3 = arith.constant 3 : index
    %c0_44 = arith.constant 0 : index
    %122 = vector.load %arg4[%c0_43, %c3, %c0_44] : memref<2x20x64xf32, #tpu.memory_space<vmem>>, vector<2x16x64xf32>
    %c8_i32_45 = arith.constant 8 : i32
    %123 = tpu.dynamic_rotate %122 by %c8_i32_45 dim 2 : vector<2x16x64xf32>, i32 -> vector<2x16x64xf32>
    %c80 = arith.constant 80 : index
    %c0_46 = arith.constant 0 : index
    %124 = vector.load %arg2[%c80, %c0_46] : memref<91x64xf32, #tpu.memory_space<vmem>>, vector<1x64xf32>
    %125 = vector.shape_cast %124 : vector<1x64xf32> to vector<64xf32>
    %126 = vector.shape_cast %125 : vector<64xf32> to vector<1x1x64xf32>
    %127 = vector.broadcast %126 : vector<1x1x64xf32> to vector<2x16x64xf32>
    %128 = arith.mulf %123, %127 : vector<2x16x64xf32>
    %129 = arith.addf %121, %128 : vector<2x16x64xf32>
    %c4_i32_47 = arith.constant 4 : i32
    %130 = tpu.dynamic_rotate %122 by %c4_i32_47 dim 2 : vector<2x16x64xf32>, i32 -> vector<2x16x64xf32>
    %c81 = arith.constant 81 : index
    %c0_48 = arith.constant 0 : index
    %131 = vector.load %arg2[%c81, %c0_48] : memref<91x64xf32, #tpu.memory_space<vmem>>, vector<1x64xf32>
    %132 = vector.shape_cast %131 : vector<1x64xf32> to vector<64xf32>
    %133 = vector.shape_cast %132 : vector<64xf32> to vector<1x1x64xf32>
    %134 = vector.broadcast %133 : vector<1x1x64xf32> to vector<2x16x64xf32>
    %135 = arith.mulf %130, %134 : vector<2x16x64xf32>
    %136 = arith.addf %129, %135 : vector<2x16x64xf32>
    %c82 = arith.constant 82 : index
    %c0_49 = arith.constant 0 : index
    %137 = vector.load %arg2[%c82, %c0_49] : memref<91x64xf32, #tpu.memory_space<vmem>>, vector<1x64xf32>
    %138 = vector.shape_cast %137 : vector<1x64xf32> to vector<64xf32>
    %139 = vector.shape_cast %138 : vector<64xf32> to vector<1x1x64xf32>
    %140 = vector.broadcast %139 : vector<1x1x64xf32> to vector<2x16x64xf32>
    %141 = arith.mulf %122, %140 : vector<2x16x64xf32>
    %142 = arith.addf %136, %141 : vector<2x16x64xf32>
    %c60_i32_50 = arith.constant 60 : i32
    %143 = tpu.dynamic_rotate %122 by %c60_i32_50 dim 2 : vector<2x16x64xf32>, i32 -> vector<2x16x64xf32>
    %c83 = arith.constant 83 : index
    %c0_51 = arith.constant 0 : index
    %144 = vector.load %arg2[%c83, %c0_51] : memref<91x64xf32, #tpu.memory_space<vmem>>, vector<1x64xf32>
    %145 = vector.shape_cast %144 : vector<1x64xf32> to vector<64xf32>
    %146 = vector.shape_cast %145 : vector<64xf32> to vector<1x1x64xf32>
    %147 = vector.broadcast %146 : vector<1x1x64xf32> to vector<2x16x64xf32>
    %148 = arith.mulf %143, %147 : vector<2x16x64xf32>
    %149 = arith.addf %142, %148 : vector<2x16x64xf32>
    %c56_i32_52 = arith.constant 56 : i32
    %150 = tpu.dynamic_rotate %122 by %c56_i32_52 dim 2 : vector<2x16x64xf32>, i32 -> vector<2x16x64xf32>
    %c84 = arith.constant 84 : index
    %c0_53 = arith.constant 0 : index
    %151 = vector.load %arg2[%c84, %c0_53] : memref<91x64xf32, #tpu.memory_space<vmem>>, vector<1x64xf32>
    %152 = vector.shape_cast %151 : vector<1x64xf32> to vector<64xf32>
    %153 = vector.shape_cast %152 : vector<64xf32> to vector<1x1x64xf32>
    %154 = vector.broadcast %153 : vector<1x1x64xf32> to vector<2x16x64xf32>
    %155 = arith.mulf %150, %154 : vector<2x16x64xf32>
    %156 = arith.addf %149, %155 : vector<2x16x64xf32>
    %c0_54 = arith.constant 0 : index
    %c4 = arith.constant 4 : index
    %c0_55 = arith.constant 0 : index
    %157 = vector.load %arg4[%c0_54, %c4, %c0_55] : memref<2x20x64xf32, #tpu.memory_space<vmem>>, vector<2x16x64xf32>
    %c8_i32_56 = arith.constant 8 : i32
    %158 = tpu.dynamic_rotate %157 by %c8_i32_56 dim 2 : vector<2x16x64xf32>, i32 -> vector<2x16x64xf32>
    %c85 = arith.constant 85 : index
    %c0_57 = arith.constant 0 : index
    %159 = vector.load %arg2[%c85, %c0_57] : memref<91x64xf32, #tpu.memory_space<vmem>>, vector<1x64xf32>
    %160 = vector.shape_cast %159 : vector<1x64xf32> to vector<64xf32>
    %161 = vector.shape_cast %160 : vector<64xf32> to vector<1x1x64xf32>
    %162 = vector.broadcast %161 : vector<1x1x64xf32> to vector<2x16x64xf32>
    %163 = arith.mulf %158, %162 : vector<2x16x64xf32>
    %164 = arith.addf %156, %163 : vector<2x16x64xf32>
    %c4_i32_58 = arith.constant 4 : i32
    %165 = tpu.dynamic_rotate %157 by %c4_i32_58 dim 2 : vector<2x16x64xf32>, i32 -> vector<2x16x64xf32>
    %c86 = arith.constant 86 : index
    %c0_59 = arith.constant 0 : index
    %166 = vector.load %arg2[%c86, %c0_59] : memref<91x64xf32, #tpu.memory_space<vmem>>, vector<1x64xf32>
    %167 = vector.shape_cast %166 : vector<1x64xf32> to vector<64xf32>
    %168 = vector.shape_cast %167 : vector<64xf32> to vector<1x1x64xf32>
    %169 = vector.broadcast %168 : vector<1x1x64xf32> to vector<2x16x64xf32>
    %170 = arith.mulf %165, %169 : vector<2x16x64xf32>
    %171 = arith.addf %164, %170 : vector<2x16x64xf32>
    %c87 = arith.constant 87 : index
    %c0_60 = arith.constant 0 : index
    %172 = vector.load %arg2[%c87, %c0_60] : memref<91x64xf32, #tpu.memory_space<vmem>>, vector<1x64xf32>
    %173 = vector.shape_cast %172 : vector<1x64xf32> to vector<64xf32>
    %174 = vector.shape_cast %173 : vector<64xf32> to vector<1x1x64xf32>
    %175 = vector.broadcast %174 : vector<1x1x64xf32> to vector<2x16x64xf32>
    %176 = arith.mulf %157, %175 : vector<2x16x64xf32>
    %177 = arith.addf %171, %176 : vector<2x16x64xf32>
    %c60_i32_61 = arith.constant 60 : i32
    %178 = tpu.dynamic_rotate %157 by %c60_i32_61 dim 2 : vector<2x16x64xf32>, i32 -> vector<2x16x64xf32>
    %c88 = arith.constant 88 : index
    %c0_62 = arith.constant 0 : index
    %179 = vector.load %arg2[%c88, %c0_62] : memref<91x64xf32, #tpu.memory_space<vmem>>, vector<1x64xf32>
    %180 = vector.shape_cast %179 : vector<1x64xf32> to vector<64xf32>
    %181 = vector.shape_cast %180 : vector<64xf32> to vector<1x1x64xf32>
    %182 = vector.broadcast %181 : vector<1x1x64xf32> to vector<2x16x64xf32>
    %183 = arith.mulf %178, %182 : vector<2x16x64xf32>
    %184 = arith.addf %177, %183 : vector<2x16x64xf32>
    %c56_i32_63 = arith.constant 56 : i32
    %185 = tpu.dynamic_rotate %157 by %c56_i32_63 dim 2 : vector<2x16x64xf32>, i32 -> vector<2x16x64xf32>
    %c89 = arith.constant 89 : index
    %c0_64 = arith.constant 0 : index
    %186 = vector.load %arg2[%c89, %c0_64] : memref<91x64xf32, #tpu.memory_space<vmem>>, vector<1x64xf32>
    %187 = vector.shape_cast %186 : vector<1x64xf32> to vector<64xf32>
    %188 = vector.shape_cast %187 : vector<64xf32> to vector<1x1x64xf32>
    %189 = vector.broadcast %188 : vector<1x1x64xf32> to vector<2x16x64xf32>
    %190 = arith.mulf %185, %189 : vector<2x16x64xf32>
    %191 = arith.addf %184, %190 : vector<2x16x64xf32>
    %c90 = arith.constant 90 : index
    %c0_65 = arith.constant 0 : index
    %192 = vector.load %arg2[%c90, %c0_65] : memref<91x64xf32, #tpu.memory_space<vmem>>, vector<1x64xf32>
    %193 = vector.shape_cast %192 : vector<1x64xf32> to vector<64xf32>
    %194 = vector.shape_cast %193 : vector<64xf32> to vector<1x1x64xf32>
    %195 = vector.broadcast %194 : vector<1x1x64xf32> to vector<2x16x64xf32>
    %196 = arith.addf %191, %195 : vector<2x16x64xf32>
    %197 = arith.negf %196 : vector<2x16x64xf32>
    %198 = math.exp %197 : vector<2x16x64xf32>
    %cst_66 = arith.constant 1.000000e+00 : f32
    %199 = vector.broadcast %cst_66 : f32 to vector<2x16x64xf32>
    %200 = arith.addf %199, %198 : vector<2x16x64xf32>
    %201 = arith.divf %199, %200 : vector<2x16x64xf32>
    %202 = arith.mulf %196, %201 : vector<2x16x64xf32>
    %203 = tpu.concatenate %12, %202 in 2 : vector<2x16x64xf32>, vector<2x16x64xf32> -> vector<2x16x128xf32>
    %c0_67 = arith.constant 0 : index
    %c0_68 = arith.constant 0 : index
    %c0_69 = arith.constant 0 : index
    %204 = vector.load %arg3[%c0_67, %c0_68, %c0_69] : memref<2x16x128xf32, #tpu.memory_space<vmem>>, vector<2x16x128xf32>
    tpu.vector_store %arg3[%c0_67, %c0_68, %c0_69], %203 {strides = array<i32>} : memref<2x16x128xf32, #tpu.memory_space<vmem>>, vector<2x16x128xf32>,
    return
  }
  func.func @transform_0(%arg0: i32) -> (i32, i32) {
    %c0_i32 = arith.constant 0 : i32
    %c0_i32_0 = arith.constant 0 : i32
    %c0_i32_1 = arith.constant 0 : i32
    return %c0_i32, %c0_i32_0 : i32, i32
  }
  func.func @transform_1(%arg0: i32) -> (i32, i32) {
    %c0_i32 = arith.constant 0 : i32
    %c0_i32_0 = arith.constant 0 : i32
    %c0_i32_1 = arith.constant 0 : i32
    return %c0_i32, %c0_i32_0 : i32, i32
  }
  func.func @transform_2(%arg0: i32) -> (i32, i32, i32) {
    %c0_i32 = arith.constant 0 : i32
    %c0_i32_0 = arith.constant 0 : i32
    %c0_i32_1 = arith.constant 0 : i32
    %c0_i32_2 = arith.constant 0 : i32
    return %c0_i32, %c0_i32_0, %c0_i32_1 : i32, i32, i32
  }
}

</mosaic_0001>

<bundles_post_ra>
// kernel: tpu_custom_call.1
= control target key start
LH: loop header
LB: loop body
LE: loop exit
PB: predicated region body
PF: predicated region fallthrough
CT: control target
= control target key end

     0   :  { %s2086_s0 = inlined_call_operand.vmem [shape: f32[32,64], index: 0, kind: input, shape index: {}]   ;;  %s2087_s1 = inlined_call_operand.vmem [shape: f32[91,64], index: 1, kind: input, shape index: {}]   ;;  %s2088_s2 = inlined_call_operand.hbm [shape: f32[2,16,128], index: 2, kind: output, shape index: {}]  }
   0x1   :  { %v23_v0 = vld [vmem:[%s2087_s1 + $0x38] sm:$0xff]  ;;  %v22_v1 = vld [vmem:[%s2087_s1 + $0x30] sm:$0xff]  ;;  %v21_v2 = vld [vmem:[%s2087_s1 + $0x28] sm:$0xff] }
   0x2   :  { %1164 = vmatprep.subr.mxu0 %v23_v0  ;;  %1186 = vmatprep.subr.mxu1 %v23_v0  ;;  %v20_v3 = vld [vmem:[%s2087_s1 + $0x20] sm:$0xff] }
   0x3   :  { %1165 = vmatpush3.msra.mxu0 %v23_v0  ;;  %1194 = vmatpush3.msra.mxu1 %v23_v0 }
   0x4   :  { %1166 = vmatprep.subr.mxu0 %v22_v1  ;;  %1187 = vmatprep.subr.mxu1 %v22_v1 }
   0x5   :  { %1167 = vmatpush3.msra.mxu0 %v22_v1  ;;  %1195 = vmatpush3.msra.mxu1 %v22_v1 }
   0x6   :  { %7 = vsyncpa [#allocation4], 0  ;;  %1168 = vmatprep.subr.mxu0 %v21_v2  ;;  %1188 = vmatprep.subr.mxu1 %v21_v2  ;;  %v19_v4 = vld [vmem:[%s2087_s1 + $0x18] sm:$0xff]  ;;  %v18_v5 = vld [vmem:[%s2087_s1 + $0x10] sm:$0xff]  ;;  %vm29_vm0 = vcmask 523264   ;;  %s1267_s7 = smov 4  }
   0x7   :  { %1169 = vmatpush3.msra.mxu0 %v21_v2  ;;  %1196 = vmatpush3.msra.mxu1 %v21_v2  ;;  %v17_v6 = vld [vmem:[%s2087_s1 + $0x8] sm:$0xff]  ;;  %v16_v7 = vld [vmem:[%s2087_s1] sm:$0xff]  ;;  %v14_v9 = vld [vmem:[%s2086_s0 + $0x10] sm:$0xff]  ;;  %s1269_s14 = smov 8   ;;  %s1270_s10 = smov 56   ;;  %vm157_vm1 = vcmask 519168  }
   0x8   :  { %1170 = vmatprep.subr.mxu0 %v20_v3  ;;  %1189 = vmatprep.subr.mxu1 %v20_v3  ;;  %v12_v8 = vld [vmem:[%s2086_s0] sm:$0xff]  ;;  %v13_v10 = vld [vmem:[%s2086_s0 + $0x8] sm:$0xff]  ;;  %v15_v11 = vld [vmem:[%s2086_s0 + $0x18] sm:$0xff]  ;;  %s1268_s0 = smov 60   ;;  %v1271_v28 = vmov 0.0   ;;  %s1272_s22 = smov 64  }
   0x9   :  { %1171 = vmatpush3.msra.mxu0 %v20_v3  ;;  %1197 = vmatpush3.msra.mxu1 %v20_v3  ;;  %v1125_v12 = vld [vmem:[%s2087_s1 + $0x44] ss:$0 sm:$0xff]  ;;  %v1123_v13 = vld [vmem:[%s2087_s1 + $0x42] ss:$0 sm:$0xff]  ;;  %v1128_v14 = vld [vmem:[%s2087_s1 + $0x47] ss:$0 sm:$0xff] }
   0xa   :  { %1172 = vmatprep.subr.mxu0 %v19_v4  ;;  %1190 = vmatprep.subr.mxu1 %v19_v4  ;;  %v1126_v15 = vld [vmem:[%s2087_s1 + $0x45] ss:$0 sm:$0xff]  ;;  %v1131_v16 = vld [vmem:[%s2087_s1 + $0x4a] ss:$0 sm:$0xff]  ;;  %v1130_v17 = vld [vmem:[%s2087_s1 + $0x49] ss:$0 sm:$0xff] }
   0xb   :  { %1173 = vmatpush3.msra.mxu0 %v19_v4  ;;  %1198 = vmatpush3.msra.mxu1 %v19_v4  ;;  %v1135_v18 = vld [vmem:[%s2087_s1 + $0x4e] ss:$0 sm:$0xff]  ;;  %v1133_v19 = vld [vmem:[%s2087_s1 + $0x4c] ss:$0 sm:$0xff]  ;;  %v1138_v20 = vld [vmem:[%s2087_s1 + $0x51] ss:$0 sm:$0xff] }
   0xc   :  { %1174 = vmatprep.subr.mxu0 %v18_v5  ;;  %1191 = vmatprep.subr.mxu1 %v18_v5  ;;  %v1136_v21 = vld [vmem:[%s2087_s1 + $0x4f] ss:$0 sm:$0xff]  ;;  %v1141_v22 = vld [vmem:[%s2087_s1 + $0x54] ss:$0 sm:$0xff]  ;;  %v1140_v23 = vld [vmem:[%s2087_s1 + $0x53] ss:$0 sm:$0xff] }
   0xd   :  { %1175 = vmatpush3.msra.mxu0 %v18_v5  ;;  %1199 = vmatpush3.msra.mxu1 %v18_v5  ;;  %v1145_v24 = vld [vmem:[%s2087_s1 + $0x58] ss:$0 sm:$0xff]  ;;  %v1143_v25 = vld [vmem:[%s2087_s1 + $0x56] ss:$0 sm:$0xff]  ;;  %v1122_v26 = vld [vmem:[%s2087_s1 + $0x41] ss:$0 sm:$0xff] }
   0xe   :  { %1176 = vmatprep.subr.mxu0 %v17_v6  ;;  %1192 = vmatprep.subr.mxu1 %v17_v6  ;;  %v1146_v27 = vld [vmem:[%s2087_s1 + $0x59] ss:$0 sm:$0xff]  ;;  %156 = vst.msk [vmem:[#allocation2 + $0x8] sm:$0xff] %vm29_vm0, %v1271_v28  ;;  %155 = vst.msk [vmem:[#allocation2] sm:$0xff] %vm29_vm0, %v1271_v28  ;;  %v1132_v29 = vld [vmem:[%s2087_s1 + $0x4b] ss:$0 sm:$0xff] }
   0xf   :  { %1177 = vmatpush3.msra.mxu0 %v17_v6  ;;  %1200 = vmatpush3.msra.mxu1 %v17_v6  ;;  %158 = vst.msk [vmem:[#allocation2 + $0x10] sm:$0xf] %vm157_vm1, %v1271_v28  ;;  %161 = vst.msk [vmem:[#allocation2 + $0x28] sm:$0xf] %vm157_vm1, %v1271_v28  ;;  %v1127_v30 = vld [vmem:[%s2087_s1 + $0x46] ss:$0 sm:$0xff] }
  0x10   :  { %1178 = vmatprep.subr.mxu0 %v16_v7  ;;  %1193 = vmatprep.subr.mxu1 %v16_v7  ;;  %159 = vst.msk [vmem:[#allocation2 + $0x18] sm:$0xff] %vm29_vm0, %v1271_v28  ;;  %160 = vst.msk [vmem:[#allocation2 + $0x20] sm:$0xff] %vm29_vm0, %v1271_v28  ;;  %v1142_v31 = vld [vmem:[%s2087_s1 + $0x55] ss:$0 sm:$0xff]  ;;  %v1137_v32 = vld [vmem:[%s2087_s1 + $0x50] ss:$0 sm:$0xff] }
  0x11   :  { %1179 = vmatpush3.msra.mxu0 %v16_v7  ;;  %1201 = vmatpush3.msra.mxu1 %v16_v7  ;;  %v1113_v33 = vld [vmem:[%s2087_s1 + $0x40] ss:$0 sm:$0xff]  ;;  %vm170_vm2 = vcmask 1048064   ;;  %s1273_s5 = smov 124   ;;  %s1274_s6 = smov 52  }
  0x12   :  { %1180 = vmatprep.mubr.msk.f32.mxu0 %vm29_vm0, %v12_v8  ;;  %1183 = vmatprep.mubr.msk.f32.mxu1 %vm29_vm0, %v14_v9  ;;  %s1275_s8 = smov 48  }
  0x13   :  { %1181 = vmatmul.mubr.msk.f32.vlgmr.msra.gmra.mxu0 %vm29_vm0, %v13_v10  ;;  %1184 = vmatmul.mubr.msk.f32.vlgmr.msra.gmra.mxu1 %vm29_vm0, %v15_v11 }
  0x14   :  { %280 = vrot.lane.b32.xlu1 %v1125_v12, %s1267_s7  ;;  %218 = vrot.lane.b32.xlu0 %v1123_v13, %s1268_s0 }
  0x18   :  { %391 = vrot.lane.b32.xlu1 %v1128_v14, %s1268_s0  ;;  %313 = vrot.lane.b32.xlu0 %v1126_v15, %s1269_s14 }
  0x1c   :  { %486 = vrot.lane.b32.xlu1 %v1131_v16, %s1269_s14  ;;  %453 = vrot.lane.b32.xlu0 %v1130_v17, %s1267_s7  ;;  %v1134_v17 = vld [vmem:[%s2087_s1 + $0x4d] ss:$0 sm:$0xff] }
  0x20   :  { %626 = vrot.lane.b32.xlu1 %v1135_v18, %s1267_s7  ;;  %564 = vrot.lane.b32.xlu0 %v1133_v19, %s1268_s0  ;;  %v1139_v19 = vld [vmem:[%s2087_s1 + $0x52] ss:$0 sm:$0xff] }
  0x24   :  { %737 = vrot.lane.b32.xlu1 %v1138_v20, %s1268_s0  ;;  %659 = vrot.lane.b32.xlu0 %v1136_v21, %s1269_s14 }
  0x28   :  { %832 = vrot.lane.b32.xlu1 %v1141_v22, %s1269_s14  ;;  %799 = vrot.lane.b32.xlu0 %v1140_v23, %s1267_s7  ;;  %v1144_v23 = vld [vmem:[%s2087_s1 + $0x57] ss:$0 sm:$0xff] }
  0x2c   :  { %972 = vrot.lane.b32.xlu1 %v1145_v24, %s1267_s7  ;;  %910 = vrot.lane.b32.xlu0 %v1143_v25, %s1268_s0  ;;  %v1124_v25 = vld [vmem:[%s2087_s1 + $0x43] ss:$0 sm:$0xff] }
  0x30   :  { %201 = vrot.lane.b32.xlu1 %v1122_v26, %s1270_s10  ;;  %1005 = vrot.lane.b32.xlu0 %v1146_v27, %s1269_s14 }
  0x34   :  { %547 = vrot.lane.b32.xlu1 %v1132_v29, %s1270_s10  ;;  %374 = vrot.lane.b32.xlu0 %v1127_v30, %s1270_s10  ;;  %v1129_v30 = vld [vmem:[%s2087_s1 + $0x48] ss:$0 sm:$0xff] }
  0x38   :  { %893 = vrot.lane.b32.xlu1 %v1142_v31, %s1270_s10  ;;  %720 = vrot.lane.b32.xlu0 %v1137_v32, %s1270_s10 }
  0x86   :  { %v1538_v32 = vpop.permute.xlu1 %280 }
  0xd3   :  { %v1182_v34 = vpop.f32.mrf.mxu0  ;;  %v1185_v35 = vpop.f32.mrf.mxu1 }
  0xd4   :  { %v114_v36 = vadd.f32 %v1182_v34, %v1113_v33  ;;  %v124_v37 = vadd.f32 %v1185_v35, %v1113_v33  ;;  %v1542_v34 = vpop.permute.xlu0 %218 }
  0xd5   :  { %v108_v38 = vpop.f32.mrf.mxu0  ;;  %v118_v39 = vpop.f32.mrf.mxu1 }
  0xd6   :  { %v1119_v40 = vmul.f32 -1.442695, %v114_v36  ;;  %v1121_v41 = vmul.f32 -1.442695, %v124_v37  ;;  %v109_v42 = vadd.f32 %v1113_v33, %v108_v38  ;;  %v119_v43 = vadd.f32 %v1113_v33, %v118_v39 }
  0xd8   :  { %1213 = vpow2.f32 %v1119_v40  ;;  %v1118_v44 = vmul.f32 -1.442695, %v109_v42  ;;  %v1120_v45 = vmul.f32 -1.442695, %v119_v43  ;;  %v1552_v39 = vpop.permute.xlu0 %313 }
  0xd9   :  { %1215 = vpow2.f32 %v1121_v41 }
  0xda   :  { %1217 = vpow2.f32 %v1118_v44 }
  0xdb   :  { %1219 = vpow2.f32 %v1120_v45 }
  0xdc   :  { %v1562_v44 = vpop.permute.xlu0 %453 }
  0xe5   :  { %v1214_v46 = vpop.eup %1213 }
  0xe6   :  { %v1216_v47 = vpop.eup %1215  ;;  %v140_v48 = vadd.f32 1.0, %v1214_v46 }
  0xe7   :  { %v1218_v49 = vpop.eup %1217  ;;  %v142_v50 = vadd.f32 1.0, %v1216_v47 }
  0xe8   :  { %v1220_v51 = vpop.eup %1219  ;;  %1221 = vrcp.f32 %v140_v48  ;;  %v139_v52 = vadd.f32 1.0, %v1218_v49  ;;  %v1572_v49 = vpop.permute.xlu0 %564 }
  0xe9   :  { %1223 = vrcp.f32 %v142_v50  ;;  %v141_v53 = vadd.f32 1.0, %v1220_v51 }
  0xea   :  { %1225 = vrcp.f32 %v139_v52 }
  0xeb   :  { %1227 = vrcp.f32 %v141_v53 }
  0xec   :  { %v1579_v52 = vpop.permute.xlu0 %659 }
  0xf5   :  { %v1222_v54 = vpop.eup %1221 }
  0xf6   :  { %v1224_v55 = vpop.eup %1223  ;;  %v1410_v56 = vmul.f32 %v1222_v54, %v114_v36  ;;  %v1583_v54 = vpop.permute.xlu0 %799 }
  0xf7   :  { %v1226_v57 = vpop.eup %1225  ;;  %v1412_v58 = vmul.f32 %v1224_v55, %v124_v37  ;;  %v1548_v37 = vpop.permute.xlu1 %391 }
  0xf8   :  { %2097 = vst [vmem:[#allocation6_spill] sm:$0xff] %v1410_v56  ;;  %v1228_v59 = vpop.eup %1227  ;;  %163 = vst.msk [vmem:[#allocation2 + $0xa] sm:$0xff] %vm29_vm0, %v1410_v56  ;;  %v1416_v60 = vmul.f32 %v1226_v57, %v109_v42 }
  0xf9   :  { %2098 = vst [vmem:[#allocation7_spill] sm:$0xff] %v1412_v58  ;;  %165 = vst.msk [vmem:[#allocation2 + $0x22] sm:$0xff] %vm29_vm0, %v1412_v58  ;;  %v1420_v61 = vmul.f32 %v1228_v59, %v119_v43 }
  0xfa   :  { %2099 = vst [vmem:[#allocation8_spill] sm:$0xff] %v1416_v60  ;;  %162 = vst.msk [vmem:[#allocation2 + $0x2] sm:$0xff] %vm29_vm0, %v1416_v60  ;;  %v1587_v57 = vpop.permute.xlu0 %910 }
  0xfb   :  { %2100 = vst [vmem:[#allocation9_spill] sm:$0xff] %v1420_v61  ;;  %164 = vst.msk [vmem:[#allocation2 + $0x1a] sm:$0xff] %vm29_vm0, %v1420_v61  ;;  %v1558_v42 = vpop.permute.xlu1 %486 }
  0xff   :  { %v1426_v62 = vld [vmem:[#allocation2 + $0xa] sm:$0xff]  ;;  %v1568_v47 = vpop.permute.xlu1 %626 }
 0x100   :  { %520 = vrot.lane.b32.xlu1 %v1426_v62, %s1272_s22  ;;  %v1434_v0 = vld [vmem:[#allocation2 + $0x22] sm:$0xff]  ;;  %v1442_v2 = vld [vmem:[#allocation2 + $0xb] sm:$0xff]  ;;  %v597_v20 = vmul.f32 %v1134_v17, %v1426_v62 }
 0x101   :  { %v1430_v63 = vld [vmem:[#allocation2] sm:$0xff]  ;;  %v1438_v1 = vld [vmem:[#allocation2 + $0x8] sm:$0xff]  ;;  %v770_v21 = vmul.f32 %v1139_v19, %v1442_v2  ;;  %v599_v22 = vmul.f32 %v1134_v17, %v1434_v0 }
 0x102   :  { %171 = vrot.lane.b32.xlu0 %v1430_v63, %s1272_s22  ;;  %v1446_v3 = vld [vmem:[#allocation2 + $0x1] sm:$0xff]  ;;  %v1454_v5 = vld [vmem:[#allocation2 + $0x19] sm:$0xff]  ;;  %v1458_v6 = vld [vmem:[#allocation2 + $0xc] sm:$0xff]  ;;  %v250_v27 = vmul.f32 %v1124_v25, %v1430_v63  ;;  %v251_v31 = vmul.f32 %v1124_v25, %v1438_v1 }
 0x103   :  { %v1450_v4 = vld [vmem:[#allocation2 + $0x23] sm:$0xff]  ;;  %v1470_v9 = vld [vmem:[#allocation2 + $0x1a] sm:$0xff]  ;;  %v943_v26 = vmul.f32 %v1144_v23, %v1458_v6  ;;  %v423_v38 = vmul.f32 %v1129_v30, %v1446_v3  ;;  %v425_v41 = vmul.f32 %v1129_v30, %v1454_v5  ;;  %v1577_v51 = vpop.permute.xlu1 %737 }
 0x104   :  { %526 = vrot.lane.b32.xlu1 %v1434_v0, %s1272_s22  ;;  %v1462_v7 = vld [vmem:[#allocation2 + $0x2] sm:$0xff]  ;;  %v1474_v10 = vld [vmem:[#allocation2 + $0x18] sm:$0xff]  ;;  %v772_v24 = vmul.f32 %v1139_v19, %v1450_v4  ;;  %v598_v43 = vmul.f32 %v1134_v17, %v1470_v9 }
 0x105   :  { %v1466_v8 = vld [vmem:[#allocation2 + $0x24] sm:$0xff]  ;;  %v1486_v13 = vld [vmem:[#allocation2 + $0x1b] sm:$0xff]  ;;  %v252_v29 = vmul.f32 %v1124_v25, %v1474_v10  ;;  %v596_v40 = vmul.f32 %v1134_v17, %v1462_v7  ;;  %v1591_v17 = vpop.permute.xlu0 %1005 }
 0x106   :  { %174 = vrot.lane.b32.xlu0 %v1438_v1, %s1272_s22  ;;  %v1478_v11 = vld [vmem:[#allocation2 + $0x3] sm:$0xff]  ;;  %v945_v28 = vmul.f32 %v1144_v23, %v1466_v8  ;;  %v771_v48 = vmul.f32 %v1139_v19, %v1486_v13 }
 0x107   :  { %v1482_v12 = vld [vmem:[#allocation2 + $0x20] sm:$0xff]  ;;  %v1490_v14 = vld [vmem:[#allocation2 + $0x9] sm:$0xff]  ;;  %v769_v45 = vmul.f32 %v1139_v19, %v1478_v11  ;;  %v1581_v53 = vpop.permute.xlu1 %832 }
 0x108   :  { %693 = vrot.lane.b32.xlu1 %v1442_v2, %s1272_s22  ;;  %v1494_v15 = vld [vmem:[#allocation2 + $0x4] sm:$0xff]  ;;  %v1505_v18 = vld [vmem:[#allocation2 + $0x1c] sm:$0xff]  ;;  %v424_v33 = vmul.f32 %v1129_v30, %v1490_v14  ;;  %v253_v35 = vmul.f32 %v1124_v25, %v1482_v12 }
 0x109   :  { %v1498_v16 = vld [vmem:[#allocation2 + $0x21] sm:$0xff]  ;;  %v942_v46 = vmul.f32 %v1144_v23, %v1494_v15  ;;  %v944_v50 = vmul.f32 %v1144_v23, %v1505_v18 }
 0x10a   :  { %344 = vrot.lane.b32.xlu0 %v1446_v3, %s1272_s22  ;;  %v426_v36 = vmul.f32 %v1129_v30, %v1498_v16 }
 0x10b   :  { %v1585_v55 = vpop.permute.xlu1 %972 }
 0x10c   :  { %699 = vrot.lane.b32.xlu1 %v1450_v4, %s1272_s22 }
 0x10e   :  { %350 = vrot.lane.b32.xlu0 %v1454_v5, %s1272_s22 }
 0x10f   :  { %v1589_v59 = vpop.permute.xlu1 %201 }
 0x110   :  { %866 = vrot.lane.b32.xlu1 %v1458_v6, %s1272_s22 }
 0x112   :  { %517 = vrot.lane.b32.xlu0 %v1462_v7, %s1272_s22 }
 0x113   :  { %v1593_v19 = vpop.permute.xlu1 %547 }
 0x114   :  { %872 = vrot.lane.b32.xlu1 %v1466_v8, %s1272_s22 }
 0x116   :  { %523 = vrot.lane.b32.xlu0 %v1470_v9, %s1272_s22 }
 0x118   :  { %177 = vrot.lane.b32.xlu1 %v1474_v10, %s1272_s22 }
 0x11a   :  { %690 = vrot.lane.b32.xlu0 %v1478_v11, %s1272_s22 }
 0x11c   :  { %180 = vrot.lane.b32.xlu1 %v1482_v12, %s1272_s22 }
 0x11e   :  { %696 = vrot.lane.b32.xlu0 %v1486_v13, %s1272_s22 }
 0x120   :  { %347 = vrot.lane.b32.xlu1 %v1490_v14, %s1272_s22 }
 0x122   :  { %863 = vrot.lane.b32.xlu0 %v1494_v15, %s1272_s22 }
 0x124   :  { %353 = vrot.lane.b32.xlu1 %v1498_v16, %s1272_s22 }
 0x126   :  { %869 = vrot.lane.b32.xlu0 %v1505_v18, %s1272_s22 }
 0x128   :  { %606 = vrot.lane.b32.xlu1 %v597_v20, %s1270_s10  ;;  %v1595_v20 = vpop.permute.xlu0 %374 }
 0x12a   :  { %779 = vrot.lane.b32.xlu0 %v770_v21, %s1270_s10  ;;  %v1597_v21 = vpop.permute.xlu1 %893 }
 0x12c   :  { %610 = vrot.lane.b32.xlu1 %v599_v22, %s1270_s10  ;;  %v1599_v22 = vpop.permute.xlu0 %720 }
 0x12e   :  { %783 = vrot.lane.b32.xlu0 %v772_v24, %s1270_s10 }
 0x130   :  { %952 = vrot.lane.b32.xlu1 %v943_v26, %s1270_s10 }
 0x132   :  { %258 = vrot.lane.b32.xlu0 %v250_v27, %s1270_s10 }
 0x134   :  { %956 = vrot.lane.b32.xlu1 %v945_v28, %s1270_s10 }
 0x136   :  { %262 = vrot.lane.b32.xlu0 %v252_v29, %s1270_s10 }
 0x138   :  { %260 = vrot.lane.b32.xlu1 %v251_v31, %s1270_s10 }
 0x13a   :  { %433 = vrot.lane.b32.xlu0 %v424_v33, %s1270_s10 }
 0x13c   :  { %264 = vrot.lane.b32.xlu1 %v253_v35, %s1270_s10 }
 0x13e   :  { %437 = vrot.lane.b32.xlu0 %v426_v36, %s1270_s10 }
 0x140   :  { %431 = vrot.lane.b32.xlu1 %v423_v38, %s1270_s10 }
 0x142   :  { %604 = vrot.lane.b32.xlu0 %v596_v40, %s1270_s10 }
 0x144   :  { %435 = vrot.lane.b32.xlu1 %v425_v41, %s1270_s10 }
 0x146   :  { %608 = vrot.lane.b32.xlu0 %v598_v43, %s1270_s10 }
 0x148   :  { %777 = vrot.lane.b32.xlu1 %v769_v45, %s1270_s10 }
 0x14a   :  { %950 = vrot.lane.b32.xlu0 %v942_v46, %s1270_s10 }
 0x14c   :  { %781 = vrot.lane.b32.xlu1 %v771_v48, %s1270_s10 }
 0x14e   :  { %954 = vrot.lane.b32.xlu0 %v944_v50, %s1270_s10 }
 0x172   :  { %v521_v23 = vpop.permute.xlu1 %520 }
 0x173   :  { %v522_v24 = vsel %vm170_vm2, %v521_v23, %v1426_v62 }
 0x174   :  { %531 = vrot.lane.b32.xlu1 %v522_v24, %s1272_s22  ;;  %v172_v25 = vpop.permute.xlu0 %171 }
 0x175   :  { %v173_v41 = vsel %vm170_vm2, %v172_v25, %v1430_v63 }
 0x176   :  { %v527_v26 = vpop.permute.xlu1 %526 }
 0x177   :  { %v528_v27 = vsel %vm170_vm2, %v527_v26, %v1434_v0 }
 0x178   :  { %535 = vrot.lane.b32.xlu1 %v528_v27, %s1272_s22  ;;  %v175_v28 = vpop.permute.xlu0 %174 }
 0x179   :  { %v176_v50 = vsel %vm170_vm2, %v175_v28, %v1438_v1 }
 0x17a   :  { %v694_v29 = vpop.permute.xlu1 %693 }
 0x17b   :  { %v695_v30 = vsel %vm170_vm2, %v694_v29, %v1442_v2 }
 0x17c   :  { %v345_v31 = vpop.permute.xlu0 %344  ;;  %704 = vrot.lane.b32.xlu0 %v695_v30, %s1272_s22 }
 0x17d   :  { %v346_v30 = vsel %vm170_vm2, %v345_v31, %v1446_v3 }
 0x17e   :  { %v700_v33 = vpop.permute.xlu1 %699 }
 0x17f   :  { %v701_v35 = vsel %vm170_vm2, %v700_v33, %v1450_v4 }
 0x180   :  { %v351_v36 = vpop.permute.xlu0 %350  ;;  %708 = vrot.lane.b32.xlu0 %v701_v35, %s1272_s22 }
 0x181   :  { %v352_v35 = vsel %vm170_vm2, %v351_v36, %v1454_v5 }
 0x182   :  { %v867_v38 = vpop.permute.xlu1 %866 }
 0x183   :  { %v868_v40 = vsel %vm170_vm2, %v867_v38, %v1458_v6 }
 0x184   :  { %877 = vrot.lane.b32.xlu1 %v868_v40, %s1272_s22  ;;  %183 = vrot.lane.b32.xlu0 %v173_v41, %s1272_s22  ;;  %v518_v43 = vpop.permute.xlu0 %517 }
 0x185   :  { %v519_v41 = vsel %vm170_vm2, %v518_v43, %v1462_v7 }
 0x186   :  { %v873_v45 = vpop.permute.xlu1 %872 }
 0x187   :  { %v874_v46 = vsel %vm170_vm2, %v873_v45, %v1466_v8 }
 0x188   :  { %881 = vrot.lane.b32.xlu1 %v874_v46, %s1272_s22  ;;  %v524_v24 = vpop.permute.xlu0 %523 }
 0x189   :  { %v525_v46 = vsel %vm170_vm2, %v524_v24, %v1470_v9 }
 0x18a   :  { %v178_v48 = vpop.permute.xlu1 %177 }
 0x18b   :  { %v179_v23 = vsel %vm170_vm2, %v178_v48, %v1474_v10 }
 0x18c   :  { %185 = vrot.lane.b32.xlu1 %v176_v50, %s1272_s22  ;;  %187 = vrot.lane.b32.xlu0 %v179_v23, %s1272_s22  ;;  %v691_v27 = vpop.permute.xlu0 %690 }
 0x18d   :  { %v692_v31 = vsel %vm170_vm2, %v691_v27, %v1478_v11 }
 0x18e   :  { %v181_v25 = vpop.permute.xlu1 %180 }
 0x18f   :  { %v182_v26 = vsel %vm170_vm2, %v181_v25, %v1482_v12 }
 0x190   :  { %189 = vrot.lane.b32.xlu1 %v182_v26, %s1272_s22  ;;  %v697_v40 = vpop.permute.xlu0 %696 }
 0x191   :  { %v698_v36 = vsel %vm170_vm2, %v697_v40, %v1486_v13 }
 0x192   :  { %v348_v29 = vpop.permute.xlu1 %347 }
 0x193   :  { %v349_v28 = vsel %vm170_vm2, %v348_v29, %v1490_v14 }
 0x194   :  { %356 = vrot.lane.b32.xlu1 %v346_v30, %s1272_s22  ;;  %358 = vrot.lane.b32.xlu0 %v349_v28, %s1272_s22  ;;  %v864_v45 = vpop.permute.xlu0 %863 }
 0x195   :  { %v865_v48 = vsel %vm170_vm2, %v864_v45, %v1494_v15 }
 0x196   :  { %v354_v33 = vpop.permute.xlu1 %353 }
 0x197   :  { %v355_v38 = vsel %vm170_vm2, %v354_v33, %v1498_v16 }
 0x198   :  { %360 = vrot.lane.b32.xlu1 %v352_v35, %s1272_s22  ;;  %362 = vrot.lane.b32.xlu0 %v355_v38, %s1272_s22  ;;  %v870_v50 = vpop.permute.xlu0 %869 }
 0x199   :  { %v871_v43 = vsel %vm170_vm2, %v870_v50, %v1505_v18 }
 0x19a   :  { %v1661_v23 = vpop.permute.xlu1 %606 }
 0x19c   :  { %702 = vrot.lane.b32.xlu1 %v692_v31, %s1272_s22  ;;  %529 = vrot.lane.b32.xlu0 %v519_v41, %s1272_s22  ;;  %v1665_v24 = vpop.permute.xlu0 %779 }
 0x19e   :  { %v1663_v25 = vpop.permute.xlu1 %610 }
 0x1a0   :  { %706 = vrot.lane.b32.xlu1 %v698_v36, %s1272_s22  ;;  %533 = vrot.lane.b32.xlu0 %v525_v46, %s1272_s22  ;;  %v1669_v27 = vpop.permute.xlu0 %783 }
 0x1a2   :  { %v1667_v26 = vpop.permute.xlu1 %952 }
 0x1a3   :  { %2101 = vst [vmem:[#allocation10_spill] sm:$0xff] %v1667_v26 }
 0x1a4   :  { %875 = vrot.lane.b32.xlu0 %v865_v48, %s1272_s22  ;;  %v1673_v30 = vpop.permute.xlu0 %258 }
 0x1a6   :  { %v1671_v29 = vpop.permute.xlu1 %956 }
 0x1a7   :  { %2102 = vst [vmem:[#allocation11_spill] sm:$0xff] %v1671_v29 }
 0x1a8   :  { %879 = vrot.lane.b32.xlu0 %v871_v43, %s1272_s22  ;;  %v1677_v33 = vpop.permute.xlu0 %262 }
 0x1aa   :  { %v1675_v28 = vpop.permute.xlu1 %260 }
 0x1ac   :  { %v1681_v38 = vpop.permute.xlu0 %433 }
 0x1ae   :  { %v1679_v35 = vpop.permute.xlu1 %264 }
 0x1b0   :  { %v1685_v31 = vpop.permute.xlu0 %437 }
 0x1b2   :  { %v1683_v40 = vpop.permute.xlu1 %431 }
 0x1b4   :  { %v1689_v45 = vpop.permute.xlu0 %604 }
 0x1b6   :  { %v1687_v41 = vpop.permute.xlu1 %435 }
 0x1b8   :  { %v1693_v46 = vpop.permute.xlu0 %608 }
 0x1b9   :  { %2104 = vst [vmem:[#allocation13_spill] sm:$0xff] %v1693_v46 }
 0x1ba   :  { %v1691_v36 = vpop.permute.xlu1 %777 }
 0x1bb   :  { %2103 = vst [vmem:[#allocation12_spill] sm:$0xff] %v1691_v36 }
 0x1bc   :  { %v1697_v50 = vpop.permute.xlu0 %950 }
 0x1bd   :  { %2106 = vst [vmem:[#allocation15_spill] sm:$0xff] %v1697_v50 }
 0x1be   :  { %v1695_v48 = vpop.permute.xlu1 %781 }
 0x1bf   :  { %2105 = vst [vmem:[#allocation14_spill] sm:$0xff] %v1695_v48 }
 0x1c0   :  { %v1705_v56 = vpop.permute.xlu0 %954 }
 0x1c1   :  { %2107 = vst [vmem:[#allocation16_spill] sm:$0xff] %v1705_v56 }
 0x1e6   :  { %v532_v43 = vpop.permute.xlu1 %531 }
 0x1e7   :  { %v1701_v58 = vsel %vm170_vm2, %v532_v43, %v1426_v62 }
 0x1e8   :  { %v568_v61 = vmul.f32 %v1572_v49, %v1701_v58  ;;  %v630_v56 = vmul.f32 %v1568_v47, %v1701_v58 }
 0x1ea   :  { %v536_v60 = vpop.permute.xlu1 %535  ;;  %577 = vrot.lane.b32.xlu1 %v568_v61, %s1273_s5 }
 0x1eb   :  { %v1710_v29 = vsel %vm170_vm2, %v536_v60, %v1434_v0 }
 0x1ec   :  { %v570_v50 = vmul.f32 %v1572_v49, %v1710_v29 }
 0x1ee   :  { %581 = vrot.lane.b32.xlu1 %v570_v50, %s1273_s5  ;;  %v705_v62 = vpop.permute.xlu0 %704 }
 0x1ef   :  { %v1717_v43 = vsel %vm170_vm2, %v705_v62, %v1442_v2  ;;  %v632_v2 = vmul.f32 %v1568_v47, %v1710_v29 }
 0x1f0   :  { %v741_v61 = vmul.f32 %v1577_v51, %v1717_v43 }
 0x1f2   :  { %639 = vrot.lane.b32.xlu1 %v630_v56, %s1274_s6  ;;  %750 = vrot.lane.b32.xlu0 %v741_v61, %s1273_s5  ;;  %v709_v60 = vpop.permute.xlu0 %708  ;;  %v663_v56 = vmul.f32 %v1579_v52, %v1701_v58  ;;  %v803_v61 = vmul.f32 %v1583_v54, %v1717_v43 }
 0x1f3   :  { %v1727_v0 = vsel %vm170_vm2, %v709_v60, %v1450_v4  ;;  %v665_v4 = vmul.f32 %v1579_v52, %v1710_v29 }
 0x1f4   :  { %v743_v50 = vmul.f32 %v1577_v51, %v1727_v0  ;;  %v805_v60 = vmul.f32 %v1583_v54, %v1727_v0 }
 0x1f6   :  { %643 = vrot.lane.b32.xlu1 %v632_v2, %s1274_s6  ;;  %754 = vrot.lane.b32.xlu0 %v743_v50, %s1273_s5  ;;  %v878_v62 = vpop.permute.xlu1 %877  ;;  %v184_v48 = vpop.permute.xlu0 %183 }
 0x1f7   :  { %v1747_v2 = vsel %vm170_vm2, %v878_v62, %v1458_v6 }
 0x1fa   :  { %672 = vrot.lane.b32.xlu1 %v663_v56, %s1275_s8  ;;  %812 = vrot.lane.b32.xlu0 %v803_v61, %s1274_s6  ;;  %v882_v50 = vpop.permute.xlu1 %881  ;;  %v914_v56 = vmul.f32 %v1587_v57, %v1747_v2  ;;  %v836_v61 = vmul.f32 %v1581_v53, %v1717_v43 }
 0x1fb   :  { %v1757_v26 = vsel %vm170_vm2, %v882_v50, %v1466_v8  ;;  %v976_v8 = vmul.f32 %v1585_v55, %v1747_v2 }
 0x1fc   :  { %v916_v62 = vmul.f32 %v1587_v57, %v1757_v26 }
 0x1fe   :  { %676 = vrot.lane.b32.xlu1 %v665_v4, %s1275_s8  ;;  %816 = vrot.lane.b32.xlu0 %v805_v60, %s1274_s6  ;;  %v186_v6 = vpop.permute.xlu1 %185  ;;  %v838_v4 = vmul.f32 %v1581_v53, %v1727_v0  ;;  %v1767_v60 = vsel %vm170_vm2, %v184_v48, %v1430_v63  ;;  %v188_v36 = vpop.permute.xlu0 %187 }
 0x1ff   :  { %v221_v50 = vmul.f32 %v1542_v34, %v1767_v60 }
 0x202   :  { %923 = vrot.lane.b32.xlu1 %v914_v56, %s1273_s5  ;;  %845 = vrot.lane.b32.xlu0 %v836_v61, %s1275_s8  ;;  %v1777_v56 = vsel %vm170_vm2, %v186_v6, %v1438_v1  ;;  %v1781_v61 = vsel %vm170_vm2, %v188_v36, %v1474_v10  ;;  %v190_v63 = vpop.permute.xlu1 %189  ;;  %v283_v10 = vmul.f32 %v1538_v32, %v1767_v60 }
 0x203   :  { %v222_v48 = vmul.f32 %v1542_v34, %v1777_v56  ;;  %v284_v36 = vmul.f32 %v1538_v32, %v1777_v56 }
 0x206   :  { %927 = vrot.lane.b32.xlu1 %v916_v62, %s1273_s5  ;;  %849 = vrot.lane.b32.xlu0 %v838_v4, %s1275_s8  ;;  %v223_v62 = vmul.f32 %v1542_v34, %v1781_v61  ;;  %v1791_v4 = vsel %vm170_vm2, %v190_v63, %v1482_v12  ;;  %v285_v12 = vmul.f32 %v1538_v32, %v1781_v61 }
 0x207   :  { %v224_v1 = vmul.f32 %v1542_v34, %v1791_v4  ;;  %v316_v34 = vmul.f32 %v1552_v39, %v1767_v60  ;;  %v286_v6 = vmul.f32 %v1538_v32, %v1791_v4  ;;  %v318_v63 = vmul.f32 %v1552_v39, %v1781_v61 }
 0x208   :  { %v319_v32 = vmul.f32 %v1552_v39, %v1791_v4 }
 0x20a   :  { %985 = vrot.lane.b32.xlu1 %v976_v8, %s1274_s6  ;;  %229 = vrot.lane.b32.xlu0 %v221_v50, %s1273_s5  ;;  %v359_v8 = vpop.permute.xlu0 %358  ;;  %v317_v50 = vmul.f32 %v1552_v39, %v1777_v56 }
 0x20e   :  { %231 = vrot.lane.b32.xlu1 %v222_v48, %s1273_s5  ;;  %233 = vrot.lane.b32.xlu0 %v223_v62, %s1273_s5  ;;  %v357_v48 = vpop.permute.xlu1 %356  ;;  %v1819_v62 = vsel %vm170_vm2, %v359_v8, %v1490_v14 }
 0x212   :  { %235 = vrot.lane.b32.xlu1 %v224_v1, %s1273_s5  ;;  %291 = vrot.lane.b32.xlu0 %v283_v10, %s1274_s6  ;;  %v363_v1 = vpop.permute.xlu0 %362  ;;  %v395_v10 = vmul.f32 %v1548_v37, %v1819_v62  ;;  %v361_v14 = vpop.permute.xlu1 %360 }
 0x216   :  { %293 = vrot.lane.b32.xlu1 %v284_v36, %s1274_s6  ;;  %295 = vrot.lane.b32.xlu0 %v285_v12, %s1274_s6  ;;  %v1829_v36 = vsel %vm170_vm2, %v357_v48, %v1446_v3  ;;  %v1833_v12 = vsel %vm170_vm2, %v363_v1, %v1498_v16  ;;  %v457_v3 = vmul.f32 %v1562_v44, %v1819_v62 }
 0x217   :  { %v397_v39 = vmul.f32 %v1548_v37, %v1833_v12  ;;  %v456_v8 = vmul.f32 %v1562_v44, %v1829_v36  ;;  %v489_v48 = vmul.f32 %v1558_v42, %v1829_v36  ;;  %v492_v1 = vmul.f32 %v1558_v42, %v1833_v12 }
 0x21a   :  { %297 = vrot.lane.b32.xlu1 %v286_v6, %s1274_s6  ;;  %324 = vrot.lane.b32.xlu0 %v316_v34, %s1275_s8  ;;  %v394_v34 = vmul.f32 %v1548_v37, %v1829_v36  ;;  %v1843_v6 = vsel %vm170_vm2, %v361_v14, %v1454_v5  ;;  %v459_v5 = vmul.f32 %v1562_v44, %v1833_v12 }
 0x21b   :  { %v396_v16 = vmul.f32 %v1548_v37, %v1843_v6  ;;  %v458_v37 = vmul.f32 %v1562_v44, %v1843_v6  ;;  %v491_v44 = vmul.f32 %v1558_v42, %v1843_v6 }
 0x21e   :  { %326 = vrot.lane.b32.xlu1 %v317_v50, %s1275_s8  ;;  %328 = vrot.lane.b32.xlu0 %v318_v63, %s1275_s8  ;;  %v490_v50 = vmul.f32 %v1558_v42, %v1819_v62  ;;  %v530_v63 = vpop.permute.xlu0 %529 }
 0x222   :  { %330 = vrot.lane.b32.xlu1 %v319_v32, %s1275_s8  ;;  %404 = vrot.lane.b32.xlu0 %v395_v10, %s1273_s5  ;;  %v703_v32 = vpop.permute.xlu1 %702  ;;  %v1871_v10 = vsel %vm170_vm2, %v530_v63, %v1462_v7  ;;  %v534_v14 = vpop.permute.xlu0 %533 }
 0x226   :  { %402 = vrot.lane.b32.xlu1 %v394_v34, %s1273_s5  ;;  %408 = vrot.lane.b32.xlu0 %v397_v39, %s1273_s5  ;;  %v567_v34 = vmul.f32 %v1572_v49, %v1871_v10  ;;  %v1881_v39 = vsel %vm170_vm2, %v703_v32, %v1478_v11  ;;  %v707_v7 = vpop.permute.xlu1 %706 }
 0x227   :  { %2108 = vst [vmem:[#allocation17_spill] sm:$0xff] %v1881_v39 }
 0x22a   :  { %406 = vrot.lane.b32.xlu1 %v396_v16, %s1273_s5  ;;  %466 = vrot.lane.b32.xlu0 %v457_v3, %s1274_s6  ;;  %v1885_v3 = vsel %vm170_vm2, %v534_v14, %v1470_v9  ;;  %v740_v16 = vmul.f32 %v1577_v51, %v1881_v39  ;;  %v629_v9 = vmul.f32 %v1568_v47, %v1871_v10 }
 0x22b   :  { %v569_v42 = vmul.f32 %v1572_v49, %v1885_v3  ;;  %v802_v49 = vmul.f32 %v1583_v54, %v1881_v39  ;;  %v1011_v14 = vmul.f32 %v1591_v17, %v1757_v26 }
 0x22e   :  { %464 = vrot.lane.b32.xlu1 %v456_v8, %s1274_s6  ;;  %470 = vrot.lane.b32.xlu0 %v459_v5, %s1274_s6  ;;  %v1895_v8 = vsel %vm170_vm2, %v707_v7, %v1486_v13  ;;  %v631_v13 = vmul.f32 %v1568_v47, %v1885_v3  ;;  %v662_v5 = vmul.f32 %v1579_v52, %v1871_v10 }
 0x22f   :  { %2109 = vst [vmem:[#allocation18_spill] sm:$0xff] %v1895_v8  ;;  %v742_v11 = vmul.f32 %v1577_v51, %v1895_v8  ;;  %v804_v51 = vmul.f32 %v1583_v54, %v1895_v8  ;;  %v664_v47 = vmul.f32 %v1579_v52, %v1885_v3  ;;  %v837_v54 = vmul.f32 %v1581_v53, %v1895_v8 }
 0x232   :  { %468 = vrot.lane.b32.xlu1 %v458_v37, %s1274_s6  ;;  %499 = vrot.lane.b32.xlu0 %v490_v50, %s1275_s8  ;;  %v876_v50 = vpop.permute.xlu0 %875  ;;  %v835_v37 = vmul.f32 %v1581_v53, %v1881_v39  ;;  %v1009_v53 = vmul.f32 %v1591_v17, %v1747_v2 }
 0x233   :  { %v1923_v63 = vsel %vm170_vm2, %v876_v50, %v1494_v15  ;;  %v978_v15 = vmul.f32 %v1585_v55, %v1757_v26 }
 0x234   :  { %2110 = vst [vmem:[#allocation19_spill] sm:$0xff] %v1923_v63 }
 0x236   :  { %497 = vrot.lane.b32.xlu1 %v489_v48, %s1275_s8  ;;  %503 = vrot.lane.b32.xlu0 %v492_v1, %s1275_s8  ;;  %v880_v48 = vpop.permute.xlu0 %879  ;;  %v913_v1 = vmul.f32 %v1587_v57, %v1923_v63 }
 0x237   :  { %v1933_v32 = vsel %vm170_vm2, %v880_v48, %v1505_v18  ;;  %v975_v18 = vmul.f32 %v1585_v55, %v1923_v63 }
 0x238   :  { %2111 = vst [vmem:[#allocation20_spill] sm:$0xff] %v1933_v32  ;;  %v915_v52 = vmul.f32 %v1587_v57, %v1933_v32  ;;  %v977_v57 = vmul.f32 %v1585_v55, %v1933_v32  ;;  %v1147_v55 = vld [vmem:[%s2087_s1 + $0x5a] ss:$0 sm:$0xff]  ;;  %s1276_s1 = smov [#allocation3]  }
 0x23a   :  { %501 = vrot.lane.b32.xlu1 %v491_v44, %s1275_s8  ;;  %575 = vrot.lane.b32.xlu0 %v567_v34, %s1273_s5  ;;  %v1008_v34 = vmul.f32 %v1591_v17, %v1923_v63  ;;  %v207_v63 = vmul.f32 %v1589_v59, %v1791_v4 }
 0x23e   :  { %748 = vrot.lane.b32.xlu1 %v740_v16, %s1273_s5  ;;  %579 = vrot.lane.b32.xlu0 %v569_v42, %s1273_s5  ;;  %v1010_v16 = vmul.f32 %v1591_v17, %v1933_v32 }
 0x242   :  { %752 = vrot.lane.b32.xlu1 %v742_v11, %s1273_s5  ;;  %637 = vrot.lane.b32.xlu0 %v629_v9, %s1274_s6 }
 0x246   :  { %810 = vrot.lane.b32.xlu1 %v802_v49, %s1274_s6  ;;  %641 = vrot.lane.b32.xlu0 %v631_v13, %s1274_s6 }
 0x24a   :  { %814 = vrot.lane.b32.xlu1 %v804_v51, %s1274_s6  ;;  %670 = vrot.lane.b32.xlu0 %v662_v5, %s1275_s8 }
 0x24e   :  { %843 = vrot.lane.b32.xlu1 %v835_v37, %s1275_s8  ;;  %674 = vrot.lane.b32.xlu0 %v664_v47, %s1275_s8 }
 0x252   :  { %847 = vrot.lane.b32.xlu1 %v837_v54, %s1275_s8  ;;  %921 = vrot.lane.b32.xlu0 %v913_v1, %s1273_s5 }
 0x256   :  { %989 = vrot.lane.b32.xlu1 %v978_v15, %s1274_s6  ;;  %925 = vrot.lane.b32.xlu0 %v915_v52, %s1273_s5 }
 0x25a   :  { %1018 = vrot.lane.b32.xlu1 %v1009_v53, %s1275_s8  ;;  %983 = vrot.lane.b32.xlu0 %v975_v18, %s1274_s6  ;;  %v204_v53 = vmul.f32 %v1589_v59, %v1767_v60 }
 0x25c   :  { %v1953_v44 = vpop.permute.xlu1 %577 }
 0x25e   :  { %1022 = vrot.lane.b32.xlu1 %v1011_v14, %s1275_s8  ;;  %987 = vrot.lane.b32.xlu0 %v977_v57, %s1274_s6 }
 0x260   :  { %v1959_v7 = vpop.permute.xlu1 %581 }
 0x262   :  { %1016 = vrot.lane.b32.xlu0 %v1008_v34, %s1275_s8  ;;  %v205_v34 = vmul.f32 %v1589_v59, %v1777_v56 }
 0x264   :  { %v1964_v42 = vpop.permute.xlu1 %639  ;;  %v1966_v9 = vpop.permute.xlu0 %750 }
 0x266   :  { %1020 = vrot.lane.b32.xlu0 %v1010_v16, %s1275_s8  ;;  %v206_v16 = vmul.f32 %v1589_v59, %v1781_v61  ;;  %v378_v59 = vmul.f32 %v1595_v20, %v1819_v62 }
 0x268   :  { %v1972_v11 = vpop.permute.xlu1 %643  ;;  %v1974_v49 = vpop.permute.xlu0 %754 }
 0x26a   :  { %1038 = vrot.lane.b32.xlu0 %v1147_v55, %s1270_s10  ;;  %s1102_s10 = sshll.u32 %s1276_s1, 4  ;;  %s1103_s10 = int_to_ptr.vmem [resolvable:$true] %s1102_s10 }
 0x26b   :  { %s1245_s12 = scalar_lea.vmem %s1103_s10, 512  ;;  %p1250_p1 = scmp.lt.s32.totalorder %s1103_s10, %s1103_s10 }
 0x26c   :  { %v1977_v13 = vpop.permute.xlu1 %672  ;;  %v1979_v5 = vpop.permute.xlu0 %812  ;;  %p1246_p0 = scmp.ne.s32.totalorder %s1103_s10, %s1245_s12  ;;  %p1251_p2 = scmp.lt.s32.totalorder %s1245_s12, %s1245_s12 }
 0x26e   :  { %p1252_p3 = por %p1251_p2, %p1250_p1 }
 0x270   :  { %v1981_v17 = vpop.permute.xlu1 %676  ;;  %v1983_v51 = vpop.permute.xlu0 %816  ;;  %p1253_p4 = pnand %p1252_p3, %p1246_p0 }
 0x274   :  { %v1985_v50 = vpop.permute.xlu1 %923  ;;  %v1987_v37 = vpop.permute.xlu0 %845 }
 0x275   :  { %2112 = vst [vmem:[#allocation21_spill] sm:$0xff] %v1985_v50 }
 0x278   :  { %v1989_v47 = vpop.permute.xlu1 %927  ;;  %v1991_v48 = vpop.permute.xlu0 %849 }
 0x279   :  { %2113 = vst [vmem:[#allocation22_spill] sm:$0xff] %v1989_v47  ;;  %2114 = vst [vmem:[#allocation23_spill] sm:$0xff] %v1991_v48 }
 0x27c   :  { %v1993_v54 = vpop.permute.xlu1 %985  ;;  %v230_v1 = vpop.permute.xlu0 %229 }
 0x27d   :  { %2115 = vst [vmem:[#allocation24_spill] sm:$0xff] %v1993_v54  ;;  %v241_v57 = vadd.f32 %v230_v1, %v204_v53  ;;  %v377_v1 = vmul.f32 %v1595_v20, %v1829_v36  ;;  %v379_v36 = vmul.f32 %v1595_v20, %v1843_v6 }
 0x27f   :  { %v270_v54 = vadd.f32 %v1673_v30, %v241_v57 }
 0x280   :  { %v232_v15 = vpop.permute.xlu1 %231  ;;  %v234_v52 = vpop.permute.xlu0 %233 }
 0x281   :  { %v242_v50 = vadd.f32 %v232_v15, %v205_v34  ;;  %v243_v32 = vadd.f32 %v234_v52, %v206_v16 }
 0x283   :  { %v271_v56 = vadd.f32 %v1675_v28, %v242_v50  ;;  %v272_v61 = vadd.f32 %v1677_v33, %v243_v32 }
 0x284   :  { %v236_v18 = vpop.permute.xlu1 %235  ;;  %v292_v14 = vpop.permute.xlu0 %291 }
 0x285   :  { %v303_v8 = vadd.f32 %v292_v14, %v270_v54  ;;  %v244_v53 = vadd.f32 %v236_v18, %v207_v63 }
 0x287   :  { %v273_v4 = vadd.f32 %v1679_v35, %v244_v53 }
 0x288   :  { %v294_v55 = vpop.permute.xlu1 %293  ;;  %v296_v47 = vpop.permute.xlu0 %295 }
 0x289   :  { %v304_v46 = vadd.f32 %v294_v55, %v271_v56  ;;  %v305_v15 = vadd.f32 %v296_v47, %v272_v61  ;;  %v551_v56 = vmul.f32 %v1593_v19, %v1701_v58 }
 0x28c   :  { %v298_v60 = vpop.permute.xlu1 %297  ;;  %v325_v48 = vpop.permute.xlu0 %324 }
 0x28d   :  { %v336_v39 = vadd.f32 %v325_v48, %v303_v8  ;;  %v306_v63 = vadd.f32 %v298_v60, %v273_v4 }
 0x28f   :  { %v381_v52 = vadd.f32 %v377_v1, %v336_v39  ;;  %v380_v39 = vmul.f32 %v1595_v20, %v1833_v12 }
 0x290   :  { %v327_v34 = vpop.permute.xlu1 %326  ;;  %v329_v30 = vpop.permute.xlu0 %328 }
 0x291   :  { %v337_v54 = vadd.f32 %v327_v34, %v304_v46  ;;  %v338_v14 = vadd.f32 %v329_v30, %v305_v15 }
 0x293   :  { %v382_v28 = vadd.f32 %v378_v59, %v337_v54  ;;  %v383_v50 = vadd.f32 %v379_v36, %v338_v14  ;;  %v550_v14 = vmul.f32 %v1593_v19, %v1871_v10  ;;  %v552_v10 = vmul.f32 %v1593_v19, %v1885_v3 }
 0x294   :  { %v331_v33 = vpop.permute.xlu1 %330  ;;  %v405_v8 = vpop.permute.xlu0 %404 }
 0x295   :  { %v339_v32 = vadd.f32 %v331_v33, %v306_v63  ;;  %v415_v35 = vadd.f32 %v405_v8, %v382_v28 }
 0x297   :  { %v384_v47 = vadd.f32 %v380_v39, %v339_v32  ;;  %v444_v6 = vadd.f32 %v1681_v38, %v415_v35 }
 0x298   :  { %v403_v48 = vpop.permute.xlu1 %402  ;;  %v409_v18 = vpop.permute.xlu0 %408 }
 0x299   :  { %v414_v55 = vadd.f32 %v403_v48, %v381_v52  ;;  %v417_v1 = vadd.f32 %v409_v18, %v384_v47  ;;  %v553_v52 = vmul.f32 %v1593_v19, %v1710_v29 }
 0x29b   :  { %v443_v20 = vadd.f32 %v1683_v40, %v414_v55  ;;  %v446_v12 = vadd.f32 %v1685_v31, %v417_v1 }
 0x29c   :  { %v407_v62 = vpop.permute.xlu1 %406  ;;  %v467_v57 = vpop.permute.xlu0 %466 }
 0x29d   :  { %v477_v60 = vadd.f32 %v467_v57, %v444_v6  ;;  %v416_v15 = vadd.f32 %v407_v62, %v383_v50 }
 0x29f   :  { %v445_v58 = vadd.f32 %v1687_v41, %v416_v15  ;;  %v724_v41 = vmul.f32 %v1599_v22, %v1717_v43  ;;  %v2116_v15 = vld [vmem:[#allocation13_spill] sm:$0xff] }
 0x2a0   :  { %v465_v46 = vpop.permute.xlu1 %464  ;;  %v471_v16 = vpop.permute.xlu0 %470 }
 0x2a1   :  { %v476_v30 = vadd.f32 %v465_v46, %v443_v20  ;;  %v479_v59 = vadd.f32 %v471_v16, %v446_v12  ;;  %v2117_v20 = vld [vmem:[#allocation17_spill] sm:$0xff] }
 0x2a2   :  { %v723_v12 = vmul.f32 %v1599_v22, %v2117_v20 }
 0x2a4   :  { %v469_v53 = vpop.permute.xlu1 %468  ;;  %v500_v61 = vpop.permute.xlu0 %499 }
 0x2a5   :  { %v510_v34 = vadd.f32 %v500_v61, %v477_v60  ;;  %v478_v28 = vadd.f32 %v469_v53, %v445_v58 }
 0x2a7   :  { %v555_v4 = vadd.f32 %v551_v56, %v510_v34 }
 0x2a8   :  { %v498_v54 = vpop.permute.xlu1 %497  ;;  %v504_v38 = vpop.permute.xlu0 %503 }
 0x2a9   :  { %v588_v36 = vadd.f32 %v1953_v44, %v555_v4  ;;  %v509_v63 = vadd.f32 %v498_v54, %v476_v30  ;;  %v512_v40 = vadd.f32 %v504_v38, %v479_v59 }
 0x2ab   :  { %v617_v31 = vadd.f32 %v1661_v23, %v588_v36  ;;  %v557_v50 = vadd.f32 %v553_v52, %v512_v40  ;;  %v554_v33 = vadd.f32 %v550_v14, %v509_v63  ;;  %v2119_v52 = vld [vmem:[#allocation18_spill] sm:$0xff]  ;;  %v2120_v14 = vld [vmem:[#allocation12_spill] sm:$0xff] }
 0x2ac   :  { %v502_v8 = vpop.permute.xlu1 %501  ;;  %v576_v32 = vpop.permute.xlu0 %575  ;;  %v725_v38 = vmul.f32 %v1599_v22, %v2119_v52 }
 0x2ad   :  { %v650_v39 = vadd.f32 %v1964_v42, %v617_v31  ;;  %v590_v29 = vadd.f32 %v1959_v7, %v557_v50  ;;  %v511_v47 = vadd.f32 %v502_v8, %v478_v28  ;;  %v726_v7 = vmul.f32 %v1599_v22, %v1727_v0 }
 0x2ae   :  { %v587_v16 = vadd.f32 %v576_v32, %v554_v33  ;;  %v2121_v33 = vld [vmem:[#allocation14_spill] sm:$0xff]  ;;  %v2122_v32 = vld [vmem:[#allocation19_spill] sm:$0xff] }
 0x2af   :  { %v683_v44 = vadd.f32 %v1977_v13, %v650_v39  ;;  %v619_v48 = vadd.f32 %v1663_v25, %v590_v29  ;;  %v556_v23 = vadd.f32 %v552_v10, %v511_v47  ;;  %v896_v39 = vmul.f32 %v1597_v21, %v2122_v32 }
 0x2b0   :  { %v749_v18 = vpop.permute.xlu1 %748  ;;  %v580_v62 = vpop.permute.xlu0 %579 }
 0x2b1   :  { %v728_v57 = vadd.f32 %v724_v41, %v683_v44  ;;  %v652_v35 = vadd.f32 %v1972_v11, %v619_v48  ;;  %v897_v11 = vmul.f32 %v1597_v21, %v1747_v2  ;;  %v589_v0 = vadd.f32 %v580_v62, %v556_v23  ;;  %v2123_v44 = vld [vmem:[#allocation20_spill] sm:$0xff] }
 0x2b2   :  { %v898_v22 = vmul.f32 %v1597_v21, %v2123_v44 }
 0x2b3   :  { %v761_v42 = vadd.f32 %v1966_v9, %v728_v57  ;;  %v685_v19 = vadd.f32 %v1981_v17, %v652_v35  ;;  %v616_v9 = vadd.f32 %v1689_v45, %v587_v16  ;;  %v618_v2 = vadd.f32 %v2116_v15, %v589_v0  ;;  %v2118_v45 = vld [vmem:[#allocation23_spill] sm:$0xff]  ;;  %v2126_v16 = vld [vmem:[#allocation10_spill] sm:$0xff] }
 0x2b4   :  { %v753_v3 = vpop.permute.xlu1 %752  ;;  %v638_v46 = vpop.permute.xlu0 %637 }
 0x2b5   :  { %v730_v43 = vadd.f32 %v726_v7, %v685_v19  ;;  %v790_v13 = vadd.f32 %v1665_v24, %v761_v42  ;;  %v649_v53 = vadd.f32 %v638_v46, %v616_v9  ;;  %v2124_v7 = vld [vmem:[#allocation21_spill] sm:$0xff] }
 0x2b7   :  { %v763_v25 = vadd.f32 %v1974_v49, %v730_v43  ;;  %v823_v55 = vadd.f32 %v1979_v5, %v790_v13  ;;  %v899_v49 = vmul.f32 %v1597_v21, %v1757_v26 }
 0x2b8   :  { %v811_v1 = vpop.permute.xlu1 %810  ;;  %v642_v6 = vpop.permute.xlu0 %641 }
 0x2b9   :  { %v792_v17 = vadd.f32 %v1669_v27, %v763_v25  ;;  %v856_v60 = vadd.f32 %v1987_v37, %v823_v55  ;;  %v651_v27 = vadd.f32 %v642_v6, %v618_v2  ;;  %v2127_v25 = vld [vmem:[#allocation15_spill] sm:$0xff] }
 0x2ba   :  { %v2129_v6 = vld [vmem:[#allocation11_spill] sm:$0xff] }
 0x2bb   :  { %v825_v56 = vadd.f32 %v1983_v51, %v792_v17  ;;  %v901_v24 = vadd.f32 %v897_v11, %v856_v60  ;;  %v2128_v11 = vld [vmem:[#allocation16_spill] sm:$0xff] }
 0x2bc   :  { %v815_v5 = vpop.permute.xlu1 %814  ;;  %v671_v61 = vpop.permute.xlu0 %670  ;;  %v2130_v60 = vld [vmem:[#allocation24_spill] sm:$0xff] }
 0x2bd   :  { %v682_v34 = vadd.f32 %v671_v61, %v649_v53  ;;  %v858_v30 = vadd.f32 %v2118_v45, %v825_v56  ;;  %v934_v42 = vadd.f32 %v2124_v7, %v901_v24 }
 0x2bf   :  { %v727_v59 = vadd.f32 %v723_v12, %v682_v34  ;;  %v903_v37 = vadd.f32 %v899_v49, %v858_v30  ;;  %v963_v13 = vadd.f32 %v2126_v16, %v934_v42 }
 0x2c0   :  { %v844_v4 = vpop.permute.xlu1 %843  ;;  %v675_v54 = vpop.permute.xlu0 %674 }
 0x2c1   :  { %v760_v51 = vadd.f32 %v749_v18, %v727_v59  ;;  %v684_v26 = vadd.f32 %v675_v54, %v651_v27  ;;  %v996_v53 = vadd.f32 %v2130_v60, %v963_v13 }
 0x2c3   :  { %v789_v58 = vadd.f32 %v2120_v14, %v760_v51  ;;  %v729_v36 = vadd.f32 %v725_v38, %v684_v26 }
 0x2c4   :  { %v922_v63 = vpop.permute.xlu0 %921  ;;  %v848_v31 = vpop.permute.xlu1 %847 }
 0x2c5   :  { %v822_v40 = vadd.f32 %v811_v1, %v789_v58  ;;  %v762_v28 = vadd.f32 %v753_v3, %v729_v36  ;;  %v2125_v3 = vld [vmem:[#allocation22_spill] sm:$0xff] }
 0x2c6   :  { %v936_v46 = vadd.f32 %v2125_v3, %v903_v37 }
 0x2c7   :  { %v855_v50 = vadd.f32 %v844_v4, %v822_v40  ;;  %v791_v8 = vadd.f32 %v2121_v33, %v762_v28 }
 0x2c8   :  { %v926_v29 = vpop.permute.xlu0 %925  ;;  %v990_v48 = vpop.permute.xlu1 %989  ;;  %v965_v21 = vadd.f32 %v2129_v6, %v936_v46 }
 0x2c9   :  { %v824_v47 = vadd.f32 %v815_v5, %v791_v8  ;;  %v900_v10 = vadd.f32 %v896_v39, %v855_v50 }
 0x2ca   :  { %v998_v17 = vadd.f32 %v990_v48, %v965_v21  ;;  %v2133_v48 = vld [vmem:[#allocation9_spill] sm:$0xff] }
 0x2cb   :  { %v857_v41 = vadd.f32 %v848_v31, %v824_v47  ;;  %v933_v57 = vadd.f32 %v922_v63, %v900_v10  ;;  %v2132_v10 = vld [vmem:[#allocation6_spill] sm:$0xff] }
 0x2cc   :  { %v984_v23 = vpop.permute.xlu0 %983  ;;  %v1019_v19 = vpop.permute.xlu1 %1018 }
 0x2cd   :  { %v902_v18 = vadd.f32 %v898_v22, %v857_v41  ;;  %v962_v55 = vadd.f32 %v2127_v25, %v933_v57  ;;  %v1029_v24 = vadd.f32 %v1019_v19, %v996_v53 }
 0x2cf   :  { %v935_v35 = vadd.f32 %v926_v29, %v902_v18  ;;  %v995_v56 = vadd.f32 %v984_v23, %v962_v55  ;;  %v2131_v29 = vld [vmem:[#allocation8_spill] sm:$0xff]  ;;  %v2134_v18 = vld [vmem:[#allocation7_spill] sm:$0xff] }
 0x2d0   :  { %v988_v62 = vpop.permute.xlu0 %987  ;;  %v1023_v0 = vpop.permute.xlu1 %1022 }
 0x2d1   :  { %v964_v1 = vadd.f32 %v2128_v11, %v935_v35  ;;  %v1031_v5 = vadd.f32 %v1023_v0, %v998_v17 }
 0x2d3   :  { %v997_v49 = vadd.f32 %v988_v62, %v964_v1 }
 0x2d4   :  { %v1017_v43 = vpop.permute.xlu0 %1016 }
 0x2d5   :  { %v1028_v61 = vadd.f32 %v1017_v43, %v995_v56 }
 0x2d8   :  { %v1021_v9 = vpop.permute.xlu0 %1020 }
 0x2d9   :  { %v1030_v15 = vadd.f32 %v1021_v9, %v997_v49 }
 0x2dc   :  { %v1039_v2 = vpop.permute.xlu0 %1038 }
 0x2dd   :  { %v1041_v20 = vadd.f32 %v1039_v2, %v1028_v61  ;;  %v1042_v12 = vadd.f32 %v1039_v2, %v1029_v24  ;;  %v1043_v34 = vadd.f32 %v1039_v2, %v1030_v15  ;;  %v1044_v45 = vadd.f32 %v1039_v2, %v1031_v5 }
 0x2df   :  { %v1148_v30 = vmul.f32 -1.442695, %v1041_v20  ;;  %v1149_v27 = vmul.f32 -1.442695, %v1042_v12  ;;  %v1150_v59 = vmul.f32 -1.442695, %v1043_v34 }
 0x2e0   :  { %v1151_v37 = vmul.f32 -1.442695, %v1044_v45 }
 0x2e1   :  { %1229 = vpow2.f32 %v1148_v30 }
 0x2e2   :  { %1231 = vpow2.f32 %v1149_v27 }
 0x2e3   :  { %1233 = vpow2.f32 %v1150_v59 }
 0x2e4   :  { %1235 = vpow2.f32 %v1151_v37 }
 0x2ee   :  { %v1230_v4 = vpop.eup %1229 }
 0x2ef   :  { %v1232_v54 = vpop.eup %1231  ;;  %v1057_v51 = vadd.f32 1.0, %v1230_v4 }
 0x2f0   :  { %v1234_v52 = vpop.eup %1233  ;;  %v1058_v38 = vadd.f32 1.0, %v1232_v54 }
 0x2f1   :  { %v1236_v26 = vpop.eup %1235  ;;  %v1059_v14 = vadd.f32 1.0, %v1234_v52  ;;  %1237 = vrcp.f32 %v1057_v51 }
 0x2f2   :  { %v1060_v58 = vadd.f32 1.0, %v1236_v26  ;;  %1239 = vrcp.f32 %v1058_v38 }
 0x2f3   :  { %1241 = vrcp.f32 %v1059_v14 }
 0x2f4   :  { %1243 = vrcp.f32 %v1060_v58 }
 0x2fe   :  { %v1238_v36 = vpop.eup %1237 }
 0x2ff   :  { %v1240_v63 = vpop.eup %1239  ;;  %v1069_v40 = vmul.f32 %v1238_v36, %v1041_v20 }
 0x300   :  { %v1242_v28 = vpop.eup %1241  ;;  %v1070_v31 = vmul.f32 %v1240_v63, %v1042_v12 }
 0x301   :  { %v1244_v50 = vpop.eup %1243  ;;  %1077 = vrot.lane.b32.xlu1 %v1069_v40, %s1269_s14  ;;  %v1071_v33 = vmul.f32 %v1242_v28, %v1043_v34 }
 0x302   :  { %1079 = vrot.lane.b32.xlu0 %v1070_v31, %s1269_s14  ;;  %v1072_v8 = vmul.f32 %v1244_v50, %v1044_v45 }
 0x305   :  { %1081 = vrot.lane.b32.xlu1 %v1071_v33, %s1269_s14 }
 0x306   :  { %1083 = vrot.lane.b32.xlu0 %v1072_v8, %s1269_s14 }
 0x373   :  { %v1078_v32 = vpop.permute.xlu1 %1077 }
 0x374   :  { %v1080_v39 = vpop.permute.xlu0 %1079  ;;  %v1089_v47 = vsel %vm29_vm0, %v2131_v29, %v1078_v32 }
 0x375   :  { %v1090_v41 = vsel %vm29_vm0, %v2132_v10, %v1080_v39  ;;  %1093 = vst [vmem:[#allocation3] sm:$0xff] %v1089_v47 }
 0x376   :  { %1094 = vst [vmem:[#allocation3 + $0x8] sm:$0xff] %v1090_v41 }
 0x377   :  { %v1082_v44 = vpop.permute.xlu1 %1081 }
 0x378   :  { %v1084_v22 = vpop.permute.xlu0 %1083  ;;  %v1091_v23 = vsel %vm29_vm0, %v2133_v48, %v1082_v44 }
 0x379   :  { %v1092_v62 = vsel %vm29_vm0, %v2134_v18, %v1084_v22  ;;  %1095 = vst [vmem:[#allocation3 + $0x10] sm:$0xff] %v1091_v23 }
 0x37a   :  { %1096 = vst [vmem:[#allocation3 + $0x18] sm:$0xff] %v1092_v62 }
 0x37b   :  { %1256 = shalt.err (!%p1253_p4)
}
 0x37c   :  { %s1277_s7 = smov 128  }
 0x37d   :  { %1108 = dma.vmem_to_hbm [thread:$0]  %s1103_s10, 512, %s2088_s2, [#allocation4], %s1277_s7, %s1277_s7, %s1269_s14  }
 0x37e   :  { %1265 = dma.done.wait [#allocation4], 512  }
 0x37f   :  { %1266 = vsyncadd [#allocation4], 4294966784 }
 0x380   :  { %1112 = vsyncpa [#allocation4], 1 }

</bundles_post_ra>
